<compile_context>
chip_gen: v7x
topology: tpu7x:2x2x1
jax: 0.10.0
libtpu: 0.0.40
codegen_flags: <defaults>
</compile_context>

<pallas_src>
import functools

import jax
import jax.numpy as jnp
from jax import lax
from jax.experimental import pallas as pl
from jax.experimental.pallas import tpu as pltpu


# ---------------------------------------------------------------------------
# Kernel 1: fused stride-1 conv   out = act(sum_taps x_win @ w_tap + b) [+ res]
# ---------------------------------------------------------------------------
def _fused_conv_kernel(x_ref, w_ref, b_ref, *rest, kh, kw, ho, wo, act, slope,
                       has_residual):
    if has_residual:
        r_ref, o_ref = rest
    else:
        (o_ref,) = rest
    ci = x_ref.shape[-1]
    co = o_ref.shape[-1]

    acc = jnp.zeros((ho * wo, co), jnp.float32)
    # In-kernel "im2col": slice the kh*kw shifted windows straight out of the
    # padded VMEM tile (static offsets) and accumulate one bf16 MXU dot each.
    for dy in range(kh):
        for dx in range(kw):
            xs = x_ref[0, pl.ds(dy, ho), pl.ds(dx, wo), :]
            xs = xs.reshape(ho * wo, ci).astype(jnp.bfloat16)
            acc = acc + jnp.dot(xs, w_ref[dy * kw + dx],
                                preferred_element_type=jnp.float32)

    r = acc + b_ref[...].astype(jnp.float32)
    if act == "relu":
        r = jnp.maximum(r, 0.0)
    elif act == "leaky_relu":
        r = jnp.where(r > 0, r, slope * r)
    elif act == "tanh":
        r = jnp.tanh(r)
    if has_residual:
        r = r + r_ref[0].astype(jnp.float32)
    o_ref[0] = r.astype(o_ref.dtype)


def conv_stride1(x, w_hwio, b, *, act="none", slope=0.2, residual=None):
    """Valid (already padded) stride-1 conv.  x: NHWC f32, w: HWIO."""
    n, hin, win, ci = x.shape
    kh, kw, ci2, co = w_hwio.shape
    assert ci == ci2
    ho, wo = hin - kh + 1, win - kw + 1

    w_taps = w_hwio.reshape(kh * kw, ci, co).astype(jnp.bfloat16)
    b2 = jnp.asarray(b, jnp.float32).reshape(1, co)

    inputs = [x, w_taps, b2]
    in_specs = [
        pl.BlockSpec((1, hin, win, ci), lambda i: (i, 0, 0, 0)),
        pl.BlockSpec((kh * kw, ci, co), lambda i: (0, 0, 0)),
        pl.BlockSpec((1, co), lambda i: (0, 0)),
    ]
    if residual is not None:
        inputs.append(residual.reshape(n, ho * wo, co))
        in_specs.append(pl.BlockSpec((1, ho * wo, co), lambda i: (i, 0, 0)))

    kernel = functools.partial(
        _fused_conv_kernel, kh=kh, kw=kw, ho=ho, wo=wo, act=act, slope=slope,
        has_residual=residual is not None)

    out = pl.pallas_call(
        kernel,
        out_shape=jax.ShapeDtypeStruct((n, ho * wo, co), x.dtype),
        grid=(n,),
        in_specs=in_specs,
        out_specs=pl.BlockSpec((1, ho * wo, co), lambda i: (i, 0, 0)),
        compiler_params=pltpu.CompilerParams(
            dimension_semantics=("parallel",)),
        cost_estimate=pl.CostEstimate(
            flops=2 * n * ho * wo * kh * kw * ci * co,
            transcendentals=n * ho * wo * co if act == "tanh" else 0,
            bytes_accessed=(x.size * x.dtype.itemsize + int(w_taps.size) * 2 +
                            n * ho * wo * co * 4 *
                            (2 if residual is not None else 1))),
    )(*inputs)
    return out.reshape(n, ho, wo, co)


# ---------------------------------------------------------------------------
# Kernel 2: fused ResnetBlock_nonorm
#   out = x + conv3x3(reflect_pad(relu(conv3x3(reflect_pad(x)))))
# The intermediate activation is reflect-padded inside a VMEM scratch.
# ---------------------------------------------------------------------------
def _fused_resblock_kernel(x_ref, w1_ref, b1_ref, w2_ref, b2_ref, o_ref,
                           hp_ref, *, h, w):
    c = x_ref.shape[-1]

    acc = jnp.zeros((h * w, c), jnp.float32)
    for dy in range(3):
        for dx in range(3):
            xs = x_ref[0, pl.ds(dy, h), pl.ds(dx, w), :]
            xs = xs.reshape(h * w, c).astype(jnp.bfloat16)
            acc = acc + jnp.dot(xs, w1_ref[dy * 3 + dx],
                                preferred_element_type=jnp.float32)
    mid = jnp.maximum(acc + b1_ref[...].astype(jnp.float32), 0.0)
    mid = mid.reshape(h, w, c).astype(hp_ref.dtype)

    # Reflect-pad the intermediate by 1 entirely inside VMEM.
    hp_ref[pl.ds(1, h), pl.ds(1, w), :] = mid
    hp_ref[0, pl.ds(1, w), :] = mid[1, :, :]
    hp_ref[h + 1, pl.ds(1, w), :] = mid[h - 2, :, :]
    hp_ref[:, 0, :] = hp_ref[:, 2, :]
    hp_ref[:, w + 1, :] = hp_ref[:, w - 1, :]

    acc2 = jnp.zeros((h * w, c), jnp.float32)
    for dy in range(3):
        for dx in range(3):
            hs = hp_ref[pl.ds(dy, h), pl.ds(dx, w), :].reshape(h * w, c)
            acc2 = acc2 + jnp.dot(hs, w2_ref[dy * 3 + dx],
                                  preferred_element_type=jnp.float32)
    res = x_ref[0, pl.ds(1, h), pl.ds(1, w), :].reshape(h * w, c)
    out = acc2 + b2_ref[...].astype(jnp.float32) + res.astype(jnp.float32)
    o_ref[0] = out.astype(o_ref.dtype)


def _oihw_to_hwio(w):
    return jnp.transpose(w, (2, 3, 1, 0))


def _oihw_to_taps(w):
    co, ci, kh, kw = w.shape
    return _oihw_to_hwio(w).reshape(kh * kw, ci, co).astype(jnp.bfloat16)


def resnet_block_nonorm(x, p):
    """One fused pallas_call per ResnetBlock_nonorm."""
    n, h, w, c = x.shape
    xp = jnp.pad(x, ((0, 0), (1, 1), (1, 1), (0, 0)), mode="reflect")
    w1, w2 = _oihw_to_taps(p["w1"]), _oihw_to_taps(p["w2"])
    b1 = jnp.asarray(p["b1"], jnp.float32).reshape(1, c)
    b2 = jnp.asarray(p["b2"], jnp.float32).reshape(1, c)

    out = pl.pallas_call(
        functools.partial(_fused_resblock_kernel, h=h, w=w),
        out_shape=jax.ShapeDtypeStruct((n, h * w, c), x.dtype),
        grid=(n,),
        in_specs=[
            pl.BlockSpec((1, h + 2, w + 2, c), lambda i: (i, 0, 0, 0)),
            pl.BlockSpec((9, c, c), lambda i: (0, 0, 0)),
            pl.BlockSpec((1, c), lambda i: (0, 0)),
            pl.BlockSpec((9, c, c), lambda i: (0, 0, 0)),
            pl.BlockSpec((1, c), lambda i: (0, 0)),
        ],
        out_specs=pl.BlockSpec((1, h * w, c), lambda i: (i, 0, 0)),
        scratch_shapes=[pltpu.VMEM((h + 2, w + 2, c), jnp.bfloat16)],
        compiler_params=pltpu.CompilerParams(
            dimension_semantics=("parallel",)),
        cost_estimate=pl.CostEstimate(
            flops=2 * 2 * n * h * w * 9 * c * c,
            transcendentals=0,
            bytes_accessed=(xp.size * 4 + 2 * 9 * c * c * 2 + n * h * w * c * 4)),
    )(xp, w1, b1, w2, b2)
    return out.reshape(n, h, w, c)


# ---------------------------------------------------------------------------
# Conv layer wrappers (layout plumbing only; all FLOPs run in the kernels).
# ---------------------------------------------------------------------------
def conv2d(x, w_oihw, b, *, padding=0, pad_mode="zero", act="none", slope=0.2,
           residual=None):
    if padding:
        mode = "reflect" if pad_mode == "reflect" else "constant"
        x = jnp.pad(x, ((0, 0), (padding, padding), (padding, padding), (0, 0)),
                    mode=mode)
    return conv_stride1(x, _oihw_to_hwio(w_oihw), b, act=act, slope=slope,
                        residual=residual)


def _space_to_depth(x):
    n, h, w, c = x.shape
    x = x.reshape(n, h // 2, 2, w // 2, 2, c)
    return jnp.transpose(x, (0, 1, 3, 2, 4, 5)).reshape(n, h // 2, w // 2, 4 * c)


def _depth_to_space(x):
    n, h, w, c4 = x.shape
    c = c4 // 4
    x = x.reshape(n, h, w, 2, 2, c)
    return jnp.transpose(x, (0, 1, 3, 2, 4, 5)).reshape(n, 2 * h, 2 * w, c)


def downconv_s2d(x, w_oihw, b, *, act="leaky_relu", slope=0.2):
    """3x3 / stride-2 / zero-pad-1 conv == space-to-depth(2) + 2x2 stride-1 conv."""
    n, h, w, ci = x.shape
    co, ci2, kh, kw = w_oihw.shape
    assert ci == ci2 and kh == 3 and kw == 3 and h % 2 == 0 and w % 2 == 0
    xp = jnp.pad(x, ((0, 0), (1, 1), (1, 1), (0, 0)))
    xs2d = _space_to_depth(xp)                    # (n, h/2+1, w/2+1, 4*ci)
    w_eff = jnp.zeros((2, 2, 4 * ci, co), w_oihw.dtype)
    for i in range(2):
        for j in range(2):
            for a in range(2):
                for bb in range(2):
                    dy, dx = 2 * i + a, 2 * j + bb
                    if dy < 3 and dx < 3:
                        blk = (a * 2 + bb) * ci
                        w_eff = w_eff.at[i, j, blk:blk + ci, :].set(
                            jnp.transpose(w_oihw[:, :, dy, dx], (1, 0)))
    return conv_stride1(xs2d, w_eff, b, act=act, slope=slope)


def conv_transpose2d_subpixel(x, w_t, b, *, act="relu", residual=None):
    """torch ConvTranspose2d(k=4, s=2, p=1) via the sub-pixel decomposition:
    one stride-1 3x3 conv emitting the 4 output phases as 4*Co channels,
    then depth-to-space.  Activation + module skip fused in the kernel."""
    n, h, w, ci = x.shape
    ci2, co, kh, kw = w_t.shape
    assert ci == ci2 and kh == 4 and kw == 4
    xp = jnp.pad(x, ((0, 0), (1, 1), (1, 1), (0, 0)))
    w_eff = jnp.zeros((3, 3, ci, 4 * co), w_t.dtype)
    for wy in range(3):
        for wx in range(3):
            for py in range(2):
                for px in range(2):
                    ky, kx = 3 + py - 2 * wy, 3 + px - 2 * wx
                    if 0 <= ky < 4 and 0 <= kx < 4:
                        blk = (py * 2 + px) * co
                        w_eff = w_eff.at[wy, wx, :, blk:blk + co].set(
                            w_t[:, :, ky, kx])
    b4 = jnp.tile(jnp.asarray(b, jnp.float32), 4)
    res4 = None if residual is None else _space_to_depth(residual)
    out4 = conv_stride1(xp, w_eff, b4, act=act, residual=res4)
    return _depth_to_space(out4)


# ---------------------------------------------------------------------------
# EDSkipConnectionBlock forward
# ---------------------------------------------------------------------------
def _ed_block_nhwc(x, params, *, outermost=False, innermost=False,
                   submodule=None):
    if outermost:
        y = conv2d(x, params["inconv_w"], params["inconv_b"], padding=3,
                   act="leaky_relu", slope=0.2)
        for rb in params["resblocks"]:
            y = resnet_block_nonorm(y, rb)
        if submodule is not None:
            y = submodule(y)
        for rb in params["resblocks"]:           # same weights reused, as in torch
            y = resnet_block_nonorm(y, rb)
        return conv2d(y, params["outconv_w"], params["outconv_b"], padding=3,
                      act="tanh")

    # innermost / middle: downconv + LeakyReLU -> resblocks (-> submodule ->
    # resblocks) -> ConvTranspose2d + ReLU, with the module skip out = model(x)+x
    # fused into the upconv epilogue.
    y = downconv_s2d(x, params["downconv_w"], params["downconv_b"],
                     act="leaky_relu", slope=0.2)
    for rb in params["resblocks"]:
        y = resnet_block_nonorm(y, rb)
    if not innermost and submodule is not None:
        y = submodule(y)
        for rb in params["resblocks"]:           # same weights reused, as in torch
            y = resnet_block_nonorm(y, rb)
    return conv_transpose2d_subpixel(y, params["upconv_w"], params["upconv_b"],
                                     act="relu", residual=x)


def ed_skip_connection_block(x_nchw, params, *, outermost=False,
                             innermost=False, submodule=None):
    """Forward pass (NCHW in / NCHW out, matching the torch module).
    `submodule`, if given, operates in NHWC (single layout change per block)."""
    x = jnp.transpose(x_nchw, (0, 2, 3, 1))
    y = _ed_block_nhwc(x, params, outermost=outermost, innermost=innermost,
                       submodule=submodule)
    return jnp.transpose(y, (0, 3, 1, 2))


# ---------------------------------------------------------------------------
# Self-test
# ---------------------------------------------------------------------------
if __name__ == "__main__":
    batch, outer_nc, inner_nc, hw, n_res = 2, 8, 16, 16, 6
    scale = 0.05
    keys = jax.random.split(jax.random.PRNGKey(0), 20)
    x = jax.random.normal(keys[0], (batch, outer_nc, hw, hw), jnp.float32)

    params = {
        # use_bias=False for the default BatchNorm norm_layer -> zero biases.
        "downconv_w": scale * jax.random.normal(
            keys[1], (inner_nc, outer_nc, 3, 3), jnp.float32),
        "downconv_b": jnp.zeros((inner_nc,), jnp.float32),
        "upconv_w": scale * jax.random.normal(
            keys[2], (inner_nc, outer_nc, 4, 4), jnp.float32),
        "upconv_b": jnp.zeros((outer_nc,), jnp.float32),
        "resblocks": [],
    }
    for i in range(n_res):
        params["resblocks"].append({
            "w1": scale * jax.random.normal(
                keys[3 + 2 * i], (inner_nc, inner_nc, 3, 3), jnp.float32),
            "b1": jnp.zeros((inner_nc,), jnp.float32),
            "w2": scale * jax.random.normal(
                keys[4 + 2 * i], (inner_nc, inner_nc, 3, 3), jnp.float32),
            "b2": jnp.zeros((inner_nc,), jnp.float32),
        })

    def _bf16(v):  # mirror the kernel's bf16-operand / f32-accumulate path
        return v.astype(jnp.bfloat16).astype(jnp.float32)

    # --- unit check of the fused epilogue with a NONZERO bias ---------------
    xt = jax.random.normal(keys[15], (2, 16, 16, 8), jnp.float32)
    wt = 0.1 * jax.random.normal(keys[16], (8, 8, 3, 3), jnp.float32)
    bt = 0.5 * jax.random.normal(keys[17], (8,), jnp.float32)
    rt = jax.random.normal(keys[18], (2, 16, 16, 8), jnp.float32)
    got = jax.jit(lambda a, w_, b_, r_: conv2d(
        a, w_, b_, padding=1, act="leaky_relu", slope=0.2, residual=r_))(
            xt, wt, bt, rt)
    ref_t = lax.conv_general_dilated(
        _bf16(xt), _bf16(jnp.transpose(wt, (2, 3, 1, 0))), (1, 1),
        [(1, 1), (1, 1)], dimension_numbers=("NHWC", "HWIO", "NHWC"),
        precision=lax.Precision.HIGHEST) + bt
    ref_t = jnp.where(ref_t > 0, ref_t, 0.2 * ref_t) + rt
    e = float(jnp.max(jnp.abs(got - ref_t)))
    e_rel = e / (float(jnp.max(jnp.abs(ref_t))) + 1e-6)
    assert e_rel < 1e-3, f"bias-path mismatch: abs={e} rel={e_rel}"

    # --- full innermost EDSkipConnectionBlock --------------------------------
    fwd = jax.jit(functools.partial(ed_skip_connection_block, innermost=True))
    y = jax.block_until_ready(fwd(x, params))
    assert y.shape == x.shape and y.dtype == x.dtype

    # Pure-JAX (lax conv) reference, conv operands rounded to bf16 to match
    # the kernel's bf16-operand / f32-accumulate MXU path.
    def ref_conv(v, w, b, stride, pad, pad_mode="zero"):
        if pad_mode == "reflect":
            v = jnp.pad(v, ((0, 0), (0, 0), (pad, pad), (pad, pad)),
                        mode="reflect")
            pad = 0
        out = lax.conv_general_dilated(
            _bf16(v), _bf16(w), (stride, stride), [(pad, pad), (pad, pad)],
            dimension_numbers=("NCHW", "OIHW", "NCHW"),
            precision=lax.Precision.HIGHEST)
        return out + b.reshape(1, -1, 1, 1)

    def ref_conv_t(v, w, b, stride, pad):
        kh = w.shape[2]
        w_conv = jnp.transpose(w[:, :, ::-1, ::-1], (1, 0, 2, 3))
        out = lax.conv_general_dilated(
            _bf16(v), _bf16(w_conv), (1, 1),
            [(kh - 1 - pad, kh - 1 - pad)] * 2, lhs_dilation=(stride, stride),
            dimension_numbers=("NCHW", "OIHW", "NCHW"),
            precision=lax.Precision.HIGHEST)
        return out + b.reshape(1, -1, 1, 1)

    r = ref_conv(x, params["downconv_w"], params["downconv_b"], 2, 1)
    r = jnp.where(r > 0, r, 0.2 * r)
    for rb in params["resblocks"]:
        hmid = jnp.maximum(ref_conv(r, rb["w1"], rb["b1"], 1, 1, "reflect"), 0.0)
        r = r + ref_conv(hmid, rb["w2"], rb["b2"], 1, 1, "reflect")
    ref = jnp.maximum(
        ref_conv_t(r, params["upconv_w"], params["upconv_b"], 2, 1), 0.0) + x

    err = float(jnp.max(jnp.abs(y - ref)))
    rel = err / (float(jnp.max(jnp.abs(ref))) + 1e-6)
    assert rel < 3e-3, f"mismatch vs reference: abs={err} rel={rel}"

    print("KERNEL_OK")
</pallas_src>

<mosaic_0001>
module attributes {stable_mosaic.version = 11 : i64} {
  func.func @_fused_conv_kernel(%arg0: i32, %arg1: memref<1x18x18x8xf32, #tpu.memory_space<vmem>>, %arg2: memref<9x8x8xbf16, #tpu.memory_space<vmem>>, %arg3: memref<1x8xf32, #tpu.memory_space<vmem>>, %arg4: memref<1x256x8xf32, #tpu.memory_space<vmem>>, %arg5: memref<1x256x8xf32, #tpu.memory_space<vmem>>) attributes {dimension_semantics = [#tpu.dimension_semantics<parallel>], iteration_bounds = array<i64: 2>, scalar_prefetch = 0 : i64, scratch_operands = 0 : i64, tpu.core_type = #tpu.core_type<tc>, window_params = [{transform_indices = @transform_0, window_bounds = array<i64: 1, 18, 18, 8>}, {pipeline_mode = #tpu.pipeline_mode<synchronous>, transform_indices = @transform_1, window_bounds = array<i64: 9, 8, 8>}, {pipeline_mode = #tpu.pipeline_mode<synchronous>, transform_indices = @transform_2, window_bounds = array<i64: 1, 8>}, {transform_indices = @transform_3, window_bounds = array<i64: 1, 256, 8>}, {transform_indices = @transform_4, window_bounds = array<i64: 1, 256, 8>}]} {
    %cst = arith.constant 0.000000e+00 : f32
    %0 = vector.broadcast %cst : f32 to vector<256x8xf32>
    %c0 = arith.constant 0 : index
    %c0_0 = arith.constant 0 : index
    %c0_1 = arith.constant 0 : index
    %c0_2 = arith.constant 0 : index
    %1 = vector.load %arg1[%c0, %c0_0, %c0_1, %c0_2] : memref<1x18x18x8xf32, #tpu.memory_space<vmem>>, vector<1x16x16x8xf32>
    %2 = vector.shape_cast %1 : vector<1x16x16x8xf32> to vector<16x16x8xf32>
    %3 = vector.shape_cast %2 : vector<16x16x8xf32> to vector<256x8xf32>
    %4 = arith.truncf %3 : vector<256x8xf32> to vector<256x8xbf16>
    %c0_3 = arith.constant 0 : index
    %c0_4 = arith.constant 0 : index
    %c0_5 = arith.constant 0 : index
    %5 = vector.load %arg2[%c0_3, %c0_4, %c0_5] : memref<9x8x8xbf16, #tpu.memory_space<vmem>>, vector<1x8x8xbf16>
    %6 = vector.shape_cast %5 : vector<1x8x8xbf16> to vector<8x8xbf16>
    %cst_6 = arith.constant dense<0.000000e+00> : vector<256x8xf32>
    %7 = tpu.matmul %4, %6, %cst_6 {dimension_numbers = #tpu.dot_dimension_numbers<[1], [0], [0], [1], [0, 0, 1, 1], [], []>} : vector<256x8xbf16>, vector<8x8xbf16>, vector<256x8xf32> -> vector<256x8xf32>
    %8 = arith.addf %0, %7 : vector<256x8xf32>
    %c0_7 = arith.constant 0 : index
    %c0_8 = arith.constant 0 : index
    %c1 = arith.constant 1 : index
    %c0_9 = arith.constant 0 : index
    %9 = vector.load %arg1[%c0_7, %c0_8, %c1, %c0_9] : memref<1x18x18x8xf32, #tpu.memory_space<vmem>>, vector<1x16x16x8xf32>
    %10 = vector.shape_cast %9 : vector<1x16x16x8xf32> to vector<16x16x8xf32>
    %11 = vector.shape_cast %10 : vector<16x16x8xf32> to vector<256x8xf32>
    %12 = arith.truncf %11 : vector<256x8xf32> to vector<256x8xbf16>
    %c1_10 = arith.constant 1 : index
    %c0_11 = arith.constant 0 : index
    %c0_12 = arith.constant 0 : index
    %13 = vector.load %arg2[%c1_10, %c0_11, %c0_12] : memref<9x8x8xbf16, #tpu.memory_space<vmem>>, vector<1x8x8xbf16>
    %14 = vector.shape_cast %13 : vector<1x8x8xbf16> to vector<8x8xbf16>
    %cst_13 = arith.constant dense<0.000000e+00> : vector<256x8xf32>
    %15 = tpu.matmul %12, %14, %cst_13 {dimension_numbers = #tpu.dot_dimension_numbers<[1], [0], [0], [1], [0, 0, 1, 1], [], []>} : vector<256x8xbf16>, vector<8x8xbf16>, vector<256x8xf32> -> vector<256x8xf32>
    %16 = arith.addf %8, %15 : vector<256x8xf32>
    %c0_14 = arith.constant 0 : index
    %c0_15 = arith.constant 0 : index
    %c2 = arith.constant 2 : index
    %c0_16 = arith.constant 0 : index
    %17 = vector.load %arg1[%c0_14, %c0_15, %c2, %c0_16] : memref<1x18x18x8xf32, #tpu.memory_space<vmem>>, vector<1x16x16x8xf32>
    %18 = vector.shape_cast %17 : vector<1x16x16x8xf32> to vector<16x16x8xf32>
    %19 = vector.shape_cast %18 : vector<16x16x8xf32> to vector<256x8xf32>
    %20 = arith.truncf %19 : vector<256x8xf32> to vector<256x8xbf16>
    %c2_17 = arith.constant 2 : index
    %c0_18 = arith.constant 0 : index
    %c0_19 = arith.constant 0 : index
    %21 = vector.load %arg2[%c2_17, %c0_18, %c0_19] : memref<9x8x8xbf16, #tpu.memory_space<vmem>>, vector<1x8x8xbf16>
    %22 = vector.shape_cast %21 : vector<1x8x8xbf16> to vector<8x8xbf16>
    %cst_20 = arith.constant dense<0.000000e+00> : vector<256x8xf32>
    %23 = tpu.matmul %20, %22, %cst_20 {dimension_numbers = #tpu.dot_dimension_numbers<[1], [0], [0], [1], [0, 0, 1, 1], [], []>} : vector<256x8xbf16>, vector<8x8xbf16>, vector<256x8xf32> -> vector<256x8xf32>
    %24 = arith.addf %16, %23 : vector<256x8xf32>
    %c0_21 = arith.constant 0 : index
    %c1_22 = arith.constant 1 : index
    %c0_23 = arith.constant 0 : index
    %c0_24 = arith.constant 0 : index
    %25 = vector.load %arg1[%c0_21, %c1_22, %c0_23, %c0_24] : memref<1x18x18x8xf32, #tpu.memory_space<vmem>>, vector<1x16x16x8xf32>
    %26 = vector.shape_cast %25 : vector<1x16x16x8xf32> to vector<16x16x8xf32>
    %27 = vector.shape_cast %26 : vector<16x16x8xf32> to vector<256x8xf32>
    %28 = arith.truncf %27 : vector<256x8xf32> to vector<256x8xbf16>
    %c3 = arith.constant 3 : index
    %c0_25 = arith.constant 0 : index
    %c0_26 = arith.constant 0 : index
    %29 = vector.load %arg2[%c3, %c0_25, %c0_26] : memref<9x8x8xbf16, #tpu.memory_space<vmem>>, vector<1x8x8xbf16>
    %30 = vector.shape_cast %29 : vector<1x8x8xbf16> to vector<8x8xbf16>
    %cst_27 = arith.constant dense<0.000000e+00> : vector<256x8xf32>
    %31 = tpu.matmul %28, %30, %cst_27 {dimension_numbers = #tpu.dot_dimension_numbers<[1], [0], [0], [1], [0, 0, 1, 1], [], []>} : vector<256x8xbf16>, vector<8x8xbf16>, vector<256x8xf32> -> vector<256x8xf32>
    %32 = arith.addf %24, %31 : vector<256x8xf32>
    %c0_28 = arith.constant 0 : index
    %c1_29 = arith.constant 1 : index
    %c1_30 = arith.constant 1 : index
    %c0_31 = arith.constant 0 : index
    %33 = vector.load %arg1[%c0_28, %c1_29, %c1_30, %c0_31] : memref<1x18x18x8xf32, #tpu.memory_space<vmem>>, vector<1x16x16x8xf32>
    %34 = vector.shape_cast %33 : vector<1x16x16x8xf32> to vector<16x16x8xf32>
    %35 = vector.shape_cast %34 : vector<16x16x8xf32> to vector<256x8xf32>
    %36 = arith.truncf %35 : vector<256x8xf32> to vector<256x8xbf16>
    %c4 = arith.constant 4 : index
    %c0_32 = arith.constant 0 : index
    %c0_33 = arith.constant 0 : index
    %37 = vector.load %arg2[%c4, %c0_32, %c0_33] : memref<9x8x8xbf16, #tpu.memory_space<vmem>>, vector<1x8x8xbf16>
    %38 = vector.shape_cast %37 : vector<1x8x8xbf16> to vector<8x8xbf16>
    %cst_34 = arith.constant dense<0.000000e+00> : vector<256x8xf32>
    %39 = tpu.matmul %36, %38, %cst_34 {dimension_numbers = #tpu.dot_dimension_numbers<[1], [0], [0], [1], [0, 0, 1, 1], [], []>} : vector<256x8xbf16>, vector<8x8xbf16>, vector<256x8xf32> -> vector<256x8xf32>
    %40 = arith.addf %32, %39 : vector<256x8xf32>
    %c0_35 = arith.constant 0 : index
    %c1_36 = arith.constant 1 : index
    %c2_37 = arith.constant 2 : index
    %c0_38 = arith.constant 0 : index
    %41 = vector.load %arg1[%c0_35, %c1_36, %c2_37, %c0_38] : memref<1x18x18x8xf32, #tpu.memory_space<vmem>>, vector<1x16x16x8xf32>
    %42 = vector.shape_cast %41 : vector<1x16x16x8xf32> to vector<16x16x8xf32>
    %43 = vector.shape_cast %42 : vector<16x16x8xf32> to vector<256x8xf32>
    %44 = arith.truncf %43 : vector<256x8xf32> to vector<256x8xbf16>
    %c5 = arith.constant 5 : index
    %c0_39 = arith.constant 0 : index
    %c0_40 = arith.constant 0 : index
    %45 = vector.load %arg2[%c5, %c0_39, %c0_40] : memref<9x8x8xbf16, #tpu.memory_space<vmem>>, vector<1x8x8xbf16>
    %46 = vector.shape_cast %45 : vector<1x8x8xbf16> to vector<8x8xbf16>
    %cst_41 = arith.constant dense<0.000000e+00> : vector<256x8xf32>
    %47 = tpu.matmul %44, %46, %cst_41 {dimension_numbers = #tpu.dot_dimension_numbers<[1], [0], [0], [1], [0, 0, 1, 1], [], []>} : vector<256x8xbf16>, vector<8x8xbf16>, vector<256x8xf32> -> vector<256x8xf32>
    %48 = arith.addf %40, %47 : vector<256x8xf32>
    %c0_42 = arith.constant 0 : index
    %c2_43 = arith.constant 2 : index
    %c0_44 = arith.constant 0 : index
    %c0_45 = arith.constant 0 : index
    %49 = vector.load %arg1[%c0_42, %c2_43, %c0_44, %c0_45] : memref<1x18x18x8xf32, #tpu.memory_space<vmem>>, vector<1x16x16x8xf32>
    %50 = vector.shape_cast %49 : vector<1x16x16x8xf32> to vector<16x16x8xf32>
    %51 = vector.shape_cast %50 : vector<16x16x8xf32> to vector<256x8xf32>
    %52 = arith.truncf %51 : vector<256x8xf32> to vector<256x8xbf16>
    %c6 = arith.constant 6 : index
    %c0_46 = arith.constant 0 : index
    %c0_47 = arith.constant 0 : index
    %53 = vector.load %arg2[%c6, %c0_46, %c0_47] : memref<9x8x8xbf16, #tpu.memory_space<vmem>>, vector<1x8x8xbf16>
    %54 = vector.shape_cast %53 : vector<1x8x8xbf16> to vector<8x8xbf16>
    %cst_48 = arith.constant dense<0.000000e+00> : vector<256x8xf32>
    %55 = tpu.matmul %52, %54, %cst_48 {dimension_numbers = #tpu.dot_dimension_numbers<[1], [0], [0], [1], [0, 0, 1, 1], [], []>} : vector<256x8xbf16>, vector<8x8xbf16>, vector<256x8xf32> -> vector<256x8xf32>
    %56 = arith.addf %48, %55 : vector<256x8xf32>
    %c0_49 = arith.constant 0 : index
    %c2_50 = arith.constant 2 : index
    %c1_51 = arith.constant 1 : index
    %c0_52 = arith.constant 0 : index
    %57 = vector.load %arg1[%c0_49, %c2_50, %c1_51, %c0_52] : memref<1x18x18x8xf32, #tpu.memory_space<vmem>>, vector<1x16x16x8xf32>
    %58 = vector.shape_cast %57 : vector<1x16x16x8xf32> to vector<16x16x8xf32>
    %59 = vector.shape_cast %58 : vector<16x16x8xf32> to vector<256x8xf32>
    %60 = arith.truncf %59 : vector<256x8xf32> to vector<256x8xbf16>
    %c7 = arith.constant 7 : index
    %c0_53 = arith.constant 0 : index
    %c0_54 = arith.constant 0 : index
    %61 = vector.load %arg2[%c7, %c0_53, %c0_54] : memref<9x8x8xbf16, #tpu.memory_space<vmem>>, vector<1x8x8xbf16>
    %62 = vector.shape_cast %61 : vector<1x8x8xbf16> to vector<8x8xbf16>
    %cst_55 = arith.constant dense<0.000000e+00> : vector<256x8xf32>
    %63 = tpu.matmul %60, %62, %cst_55 {dimension_numbers = #tpu.dot_dimension_numbers<[1], [0], [0], [1], [0, 0, 1, 1], [], []>} : vector<256x8xbf16>, vector<8x8xbf16>, vector<256x8xf32> -> vector<256x8xf32>
    %64 = arith.addf %56, %63 : vector<256x8xf32>
    %c0_56 = arith.constant 0 : index
    %c2_57 = arith.constant 2 : index
    %c2_58 = arith.constant 2 : index
    %c0_59 = arith.constant 0 : index
    %65 = vector.load %arg1[%c0_56, %c2_57, %c2_58, %c0_59] : memref<1x18x18x8xf32, #tpu.memory_space<vmem>>, vector<1x16x16x8xf32>
    %66 = vector.shape_cast %65 : vector<1x16x16x8xf32> to vector<16x16x8xf32>
    %67 = vector.shape_cast %66 : vector<16x16x8xf32> to vector<256x8xf32>
    %68 = arith.truncf %67 : vector<256x8xf32> to vector<256x8xbf16>
    %c8 = arith.constant 8 : index
    %c0_60 = arith.constant 0 : index
    %c0_61 = arith.constant 0 : index
    %69 = vector.load %arg2[%c8, %c0_60, %c0_61] : memref<9x8x8xbf16, #tpu.memory_space<vmem>>, vector<1x8x8xbf16>
    %70 = vector.shape_cast %69 : vector<1x8x8xbf16> to vector<8x8xbf16>
    %cst_62 = arith.constant dense<0.000000e+00> : vector<256x8xf32>
    %71 = tpu.matmul %68, %70, %cst_62 {dimension_numbers = #tpu.dot_dimension_numbers<[1], [0], [0], [1], [0, 0, 1, 1], [], []>} : vector<256x8xbf16>, vector<8x8xbf16>, vector<256x8xf32> -> vector<256x8xf32>
    %72 = arith.addf %64, %71 : vector<256x8xf32>
    %c0_63 = arith.constant 0 : index
    %c0_64 = arith.constant 0 : index
    %73 = vector.load %arg3[%c0_63, %c0_64] : memref<1x8xf32, #tpu.memory_space<vmem>>, vector<1x8xf32>
    %74 = vector.broadcast %73 : vector<1x8xf32> to vector<256x8xf32>
    %75 = arith.addf %72, %74 : vector<256x8xf32>
    %cst_65 = arith.constant 0.000000e+00 : f32
    %76 = vector.broadcast %cst_65 : f32 to vector<256x8xf32>
    %77 = arith.cmpf ogt, %75, %76 : vector<256x8xf32>
    %cst_66 = arith.constant 2.000000e-01 : f32
    %78 = vector.broadcast %cst_66 : f32 to vector<256x8xf32>
    %79 = arith.mulf %78, %75 : vector<256x8xf32>
    %80 = arith.select %77, %75, %79 : vector<256x8xi1>, vector<256x8xf32>
    %c0_67 = arith.constant 0 : index
    %c0_68 = arith.constant 0 : index
    %c0_69 = arith.constant 0 : index
    %81 = vector.load %arg4[%c0_67, %c0_68, %c0_69] : memref<1x256x8xf32, #tpu.memory_space<vmem>>, vector<1x256x8xf32>
    %82 = vector.shape_cast %81 : vector<1x256x8xf32> to vector<256x8xf32>
    %83 = arith.addf %80, %82 : vector<256x8xf32>
    %c0_70 = arith.constant 0 : index
    %c0_71 = arith.constant 0 : index
    %c0_72 = arith.constant 0 : index
    %84 = vector.load %arg5[%c0_70, %c0_71, %c0_72] : memref<1x256x8xf32, #tpu.memory_space<vmem>>, vector<1x256x8xf32>
    %85 = vector.shape_cast %84 : vector<1x256x8xf32> to vector<256x8xf32>
    %86 = vector.shape_cast %83 : vector<256x8xf32> to vector<1x256x8xf32>
    tpu.vector_store %arg5[%c0_70, %c0_71, %c0_72], %86 {strides = array<i32>} : memref<1x256x8xf32, #tpu.memory_space<vmem>>, vector<1x256x8xf32>,
    return
  }
  func.func @transform_0(%arg0: i32) -> (i32, i32, i32, i32) {
    %c0_i32 = arith.constant 0 : i32
    %c0_i32_0 = arith.constant 0 : i32
    %c0_i32_1 = arith.constant 0 : i32
    %c0_i32_2 = arith.constant 0 : i32
    return %arg0, %c0_i32, %c0_i32_0, %c0_i32_1 : i32, i32, i32, i32
  }
  func.func @transform_1(%arg0: i32) -> (i32, i32, i32) {
    %c0_i32 = arith.constant 0 : i32
    %c0_i32_0 = arith.constant 0 : i32
    %c0_i32_1 = arith.constant 0 : i32
    %c0_i32_2 = arith.constant 0 : i32
    return %c0_i32, %c0_i32_0, %c0_i32_1 : i32, i32, i32
  }
  func.func @transform_2(%arg0: i32) -> (i32, i32) {
    %c0_i32 = arith.constant 0 : i32
    %c0_i32_0 = arith.constant 0 : i32
    %c0_i32_1 = arith.constant 0 : i32
    return %c0_i32, %c0_i32_0 : i32, i32
  }
  func.func @transform_3(%arg0: i32) -> (i32, i32, i32) {
    %c0_i32 = arith.constant 0 : i32
    %c0_i32_0 = arith.constant 0 : i32
    %c0_i32_1 = arith.constant 0 : i32
    return %arg0, %c0_i32, %c0_i32_0 : i32, i32, i32
  }
  func.func @transform_4(%arg0: i32) -> (i32, i32, i32) {
    %c0_i32 = arith.constant 0 : i32
    %c0_i32_0 = arith.constant 0 : i32
    %c0_i32_1 = arith.constant 0 : i32
    return %arg0, %c0_i32, %c0_i32_0 : i32, i32, i32
  }
}

</mosaic_0001>

<bundles_post_ra>
// kernel: _lambda_.1
= control target key start
LH: loop header
LB: loop body
LE: loop exit
PB: predicated region body
PF: predicated region fallthrough
CT: control target
= control target key end

     0   :  { %s4230_s15 = smov 0   ;;  %s4962_s0 = inlined_call_operand.vmem [shape: f32[2,18,18,8], index: 0, kind: input, shape index: {}]   ;;  %s4963_s1 = inlined_call_operand.vmem [shape: bf16[9,8,8], index: 1, kind: input, shape index: {}]   ;;  %s4964_s2 = inlined_call_operand.vmem [shape: f32[1,8], index: 2, kind: input, shape index: {}]   ;;  %s4965_s3 = inlined_call_operand.vmem [shape: f32[2,256,8], index: 3, kind: input, shape index: {}]   ;;  %s4966_s4 = inlined_call_operand.vmem [shape: f32[2,256,8], index: 4, kind: output, shape index: {}]  }
   0x1 LB: > { %s3102_s16 = sadd.s32 4294967295, %s4203_s15   ;;  %p3106_p0 = scmp.ge.s32.totalorder %s4203_s15, 1  ;;  %s4203_s15 = sphi %s4230_s15, %s14_s15  }
   0x2   : > { %p172_p1 = scmp.lt.s32.totalorder %s4203_s15, 3 }
   0x4   : > { %p173_p2 = pnand %p3106_p0, %p172_p1 }
   0x5   : > { %v3112_v0 = vld [vmem:[%s4963_s1 + $0x4] sm:$0xf] (!%p173_p2)  ;;  %vm367_vm0 = vcmask (!%p173_p2), 1043456   ;;  %v4244_v1 = vld [vmem:[%s4963_s1 + $0x10] sm:$0xf] (!%p173_p2)  ;;  %p203_p3 = scmp.lt.s32.totalorder (!%p173_p2), %s3102_s16, 1 }
   0x6   : > { %176 = sbr.rel (%p173_p2) target bundleno = 527 (0x20f), region = 36  ;;  %4178 = vmatprep.subr.msk.bf16.mxu1 (!%p173_p2), %vm367_vm0, %v3112_v0  ;;  %4182 = vmatprep.subr.msk.bf16.mxu0 (!%p173_p2), %vm367_vm0, %v4244_v1  ;;  %v369_v2 = vsel (!%p173_p2), %vm367_vm0, %v3112_v0, 0  ;;  %v4252_v3 = vsel (!%p173_p2), %vm367_vm0, %v4244_v1, 0  ;;  %v267_v4 = vld [vmem:[%s4963_s1] sm:$0xf] (!%p173_p2)  ;;  %vm318_vm1 = vcmask (!%p173_p2), 64512  }
   0x7   : > { %3615 = vmatpush3.bf16.msra.mxu1 (!%p173_p2), %v369_v2  ;;  %3751 = vmatpush3.bf16.msra.mxu0 (!%p173_p2), %v4252_v3  ;;  %v3292_v5 = vld [vmem:[%s4963_s1 + $0x14] sm:$0xf] (!%p173_p2)  ;;  %v581_v14 = vsel (!%p173_p2), %vm367_vm0, %v267_v4, 0  ;;  %v3341_v20 = vld [vmem:[%s4963_s1 + $0x18] sm:$0xf] (!%p173_p2) }
   0x8   : > { %4179 = vmatprep.subr.msk.bf16.mxu1 (!%p173_p2), %vm367_vm0, %v267_v4  ;;  %4184 = vmatprep.subr.msk.bf16.mxu0 (!%p173_p2), %vm367_vm0, %v3292_v5  ;;  %v1726_v18 = vsel (!%p173_p2), %vm367_vm0, %v3292_v5, 0  ;;  %v4296_v21 = vld [vmem:[%s4963_s1 + $0x8] sm:$0xf] (!%p173_p2)  ;;  %v2021_v52 = vsel (!%p173_p2), %vm367_vm0, %v3341_v20, 0  ;;  %v4375_v53 = vld [vmem:[%s4963_s1 + $0x1c] sm:$0xf] (!%p173_p2) }
   0xd   : > { %s4968_s16 = smov (!%p203_p3, %s3102_s16), 1 }
   0xe   : > { %s4188_s25 = smul.u32 432, %s4968_s16  ;;  %s3459_s13 = sshll.u32 %s4968_s16, 8 }
   0xf   : > { %s4816_s20 = scalar_lea.vmem %s4965_s3, %s3459_s13  ;;  %s4827_s22 = scalar_lea.vmem %s4966_s4, %s3459_s13 }
  0x10   : > { %s4269_s28 = scalar_lea.vmem %s4962_s0, %s4188_s25 }
  0x11   : > { %v268_v6 = vld [vmem:[%s4269_s28 + $0x1] sm:$0xff]  ;;  %v269_v7 = vld [vmem:[%s4269_s28 + $0x9] sm:$0xff]  ;;  %v3211_v8 = vld [vmem:[%s4269_s28 + $0x19] sm:$0xff] }
  0x12   : > { %v300_v9 = vpack.c.bf16 %v269_v7, %v268_v6  ;;  %v3212_v10 = vld [vmem:[%s4269_s28 + $0x21] sm:$0xff]  ;;  %v3213_v11 = vld [vmem:[%s4269_s28 + $0x31] sm:$0xff]  ;;  %v3214_v12 = vld [vmem:[%s4269_s28 + $0x39] sm:$0xff] }
  0x13   : > { %v1365_v13 = vpack.c.bf16 %v3212_v10, %v3211_v8  ;;  %v4278_v15 = vpack.c.bf16 %v3214_v12, %v3213_v11  ;;  %v3215_v16 = vld [vmem:[%s4269_s28 + $0x49] sm:$0xff]  ;;  %v3216_v17 = vld [vmem:[%s4269_s28 + $0x51] sm:$0xff]  ;;  %v3217_v22 = vld [vmem:[%s4269_s28 + $0x61] sm:$0xff] }
  0x14   : > { %3616 = vmatprep.mubr.msk.bf16.mxu1 %vm318_vm1, %v300_v9  ;;  %v4284_v19 = vpack.c.bf16 %v3216_v17, %v3215_v16  ;;  %v3218_v23 = vld [vmem:[%s4269_s28 + $0x69] sm:$0xff]  ;;  %v3219_v24 = vld [vmem:[%s4269_s28 + $0x79] sm:$0xff]  ;;  %v3220_v25 = vld [vmem:[%s4269_s28 + $0x81] sm:$0xff] }
  0x15   : > { %3752 = vmatprep.mubr.msk.bf16.mxu0 %vm318_vm1, %v1365_v13  ;;  %3617 = vmatmul.mubr.msk.bf16.vlgmr.msra.gmra.mrb[0].mxu1 %vm318_vm1, %v1365_v13  ;;  %v4309_v26 = vpack.c.bf16 %v3218_v23, %v3217_v22  ;;  %v4311_v27 = vpack.c.bf16 %v3220_v25, %v3219_v24  ;;  %v3221_v28 = vld [vmem:[%s4269_s28 + $0x91] sm:$0xff]  ;;  %v3222_v29 = vld [vmem:[%s4269_s28 + $0x99] sm:$0xff]  ;;  %v3223_v30 = vld [vmem:[%s4269_s28 + $0xa9] sm:$0xff] }
  0x16   : > { %3649 = vmatpush3.bf16.msra.mxu1 %v581_v14  ;;  %3753 = vmatmul.mubr.msk.bf16.vlgmr.msra.gmra.mrb[0].mxu0 %vm318_vm1, %v4278_v15  ;;  %v3224_v31 = vld [vmem:[%s4269_s28 + $0xb1] sm:$0xff]  ;;  %v4325_v32 = vpack.c.bf16 %v3222_v29, %v3221_v28  ;;  %v3225_v34 = vld [vmem:[%s4269_s28 + $0xc1] sm:$0xff]  ;;  %v3226_v35 = vld [vmem:[%s4269_s28 + $0xc9] sm:$0xff] }
  0x17   : > { %3785 = vmatpush3.bf16.msra.mxu0 %v1726_v18  ;;  %3620 = vmatprep.mubr.msk.bf16.mxu1 %vm318_vm1, %v4278_v15  ;;  %v4327_v33 = vpack.c.bf16 %v3224_v31, %v3223_v30  ;;  %v3260_v36 = vld [vmem:[%s4269_s28 + $0x1a] sm:$0xff]  ;;  %v3261_v37 = vld [vmem:[%s4269_s28 + $0x22] sm:$0xff]  ;;  %v4341_v38 = vpack.c.bf16 %v3226_v35, %v3225_v34  ;;  %v3262_v42 = vld [vmem:[%s4269_s28 + $0x32] sm:$0xff] }
  0x18   : > { %3756 = vmatprep.mubr.msk.bf16.mxu0 %vm318_vm1, %v4284_v19  ;;  %4185 = vmatprep.subr.msk.bf16.mxu0 %vm367_vm0, %v3341_v20  ;;  %v4343_v39 = vpack.c.bf16 %v3261_v37, %v3260_v36  ;;  %v286_v40 = vld [vmem:[%s4269_s28 + $0xd9] sm:$0xff]  ;;  %v287_v41 = vld [vmem:[%s4269_s28 + $0xe1] sm:$0xff]  ;;  %v288_v44 = vld [vmem:[%s4269_s28 + $0xf1] sm:$0xff] }
  0x19   : > { %4180 = vmatprep.subr.msk.bf16.mxu1 %vm367_vm0, %v4296_v21  ;;  %v3263_v43 = vld [vmem:[%s4269_s28 + $0x3a] sm:$0xff]  ;;  %v3264_v46 = vld [vmem:[%s4269_s28 + $0x4a] sm:$0xff]  ;;  %v3265_v47 = vld [vmem:[%s4269_s28 + $0x52] sm:$0xff]  ;;  %v4361_v48 = vpack.c.bf16 %v287_v41, %v286_v40 }
  0x1a   : > { %v289_v45 = vld [vmem:[%s4269_s28 + $0xf9] sm:$0xff]  ;;  %v4363_v49 = vpack.c.bf16 %v3263_v43, %v3262_v42  ;;  %v4367_v51 = vpack.c.bf16 %v3265_v47, %v3264_v46  ;;  %v290_v54 = vld [vmem:[%s4269_s28 + $0x109] sm:$0xff]  ;;  %v291_v55 = vld [vmem:[%s4269_s28 + $0x111] sm:$0xff]  ;;  %v843_v47 = vsel %vm367_vm0, %v4296_v21, 0 }
  0x1b   : > { %v4365_v50 = vpack.c.bf16 %v289_v45, %v288_v44  ;;  %v3266_v56 = vld [vmem:[%s4269_s28 + $0x62] sm:$0xff]  ;;  %v3267_v57 = vld [vmem:[%s4269_s28 + $0x6a] sm:$0xff]  ;;  %v3268_v60 = vld [vmem:[%s4269_s28 + $0x7a] sm:$0xff]  ;;  %v4393_v62 = vpack.c.bf16 %v291_v55, %v290_v54 }
  0x1c   : > { %v292_v58 = vld [vmem:[%s4269_s28 + $0x121] sm:$0xff]  ;;  %v293_v59 = vld [vmem:[%s4269_s28 + $0x129] sm:$0xff]  ;;  %v4395_v63 = vpack.c.bf16 %v3267_v57, %v3266_v56  ;;  %v294_v4 = vld [vmem:[%s4269_s28 + $0x139] sm:$0xff] }
  0x1d   : > { %3621 = vmatmul.mubr.msk.bf16.gmra.mrb[4].mxu1 %vm318_vm1, %v4284_v19  ;;  %v3269_v61 = vld [vmem:[%s4269_s28 + $0x82] sm:$0xff]  ;;  %v4397_v0 = vpack.c.bf16 %v293_v59, %v292_v58  ;;  %v3270_v6 = vld [vmem:[%s4269_s28 + $0x92] sm:$0xff]  ;;  %v3271_v7 = vld [vmem:[%s4269_s28 + $0x9a] sm:$0xff] }
  0x1e   : > { %3757 = vmatmul.mubr.msk.bf16.gmra.mrb[4].mxu0 %vm318_vm1, %v4309_v26  ;;  %3624 = vmatprep.mubr.msk.bf16.mxu1 %vm318_vm1, %v4309_v26  ;;  %v4399_v2 = vpack.c.bf16 %v3269_v61, %v3268_v60  ;;  %v295_v5 = vld [vmem:[%s4269_s28 + $0x141] sm:$0xff]  ;;  %v296_v8 = vld [vmem:[%s4269_s28 + $0x151] sm:$0xff]  ;;  %v297_v9 = vld [vmem:[%s4269_s28 + $0x159] sm:$0xff]  ;;  %v4419_v13 = vpack.c.bf16 %v3271_v7, %v3270_v6 }
  0x1f   : > { %3760 = vmatprep.mubr.msk.bf16.mxu0 %vm318_vm1, %v4311_v27  ;;  %v3272_v10 = vld [vmem:[%s4269_s28 + $0xaa] sm:$0xff]  ;;  %v3273_v11 = vld [vmem:[%s4269_s28 + $0xb2] sm:$0xff]  ;;  %v4417_v12 = vpack.c.bf16 %v295_v5, %v294_v4  ;;  %v4421_v14 = vpack.c.bf16 %v297_v9, %v296_v8  ;;  %v3274_v20 = vld [vmem:[%s4269_s28 + $0xc2] sm:$0xff] }
  0x20   : > { %v4423_v16 = vpack.c.bf16 %v3273_v11, %v3272_v10  ;;  %v298_v17 = vld [vmem:[%s4269_s28 + $0x169] sm:$0xff]  ;;  %v299_v18 = vld [vmem:[%s4269_s28 + $0x171] sm:$0xff]  ;;  %v219_v23 = vld [vmem:[%s4269_s28] sm:$0xff] }
  0x21   : > { %v3275_v22 = vld [vmem:[%s4269_s28 + $0xca] sm:$0xff]  ;;  %v3276_v25 = vld [vmem:[%s4269_s28 + $0xda] sm:$0xff]  ;;  %v3277_v28 = vld [vmem:[%s4269_s28 + $0xe2] sm:$0xff]  ;;  %v4441_v29 = vpack.c.bf16 %v299_v18, %v298_v17 }
  0x22   : > { %v220_v24 = vld [vmem:[%s4269_s28 + $0x8] sm:$0xff]  ;;  %v4443_v30 = vpack.c.bf16 %v3275_v22, %v3274_v20  ;;  %v4445_v34 = vpack.c.bf16 %v3277_v28, %v3276_v25  ;;  %v221_v35 = vld [vmem:[%s4269_s28 + $0x18] sm:$0xff]  ;;  %v222_v36 = vld [vmem:[%s4269_s28 + $0x20] sm:$0xff] }
  0x23   : > { %v251_v31 = vpack.c.bf16 %v220_v24, %v219_v23  ;;  %v3278_v37 = vld [vmem:[%s4269_s28 + $0xf2] sm:$0xff]  ;;  %v3279_v40 = vld [vmem:[%s4269_s28 + $0xfa] sm:$0xff]  ;;  %v3280_v43 = vld [vmem:[%s4269_s28 + $0x10a] sm:$0xff]  ;;  %v4462_v45 = vpack.c.bf16 %v222_v36, %v221_v35 }
  0x24   : > { %v223_v41 = vld [vmem:[%s4269_s28 + $0x30] sm:$0xff]  ;;  %v224_v42 = vld [vmem:[%s4269_s28 + $0x38] sm:$0xff]  ;;  %v4464_v46 = vpack.c.bf16 %v3279_v40, %v3278_v37  ;;  %v4477_v55 = vld [vmem:[%s4963_s1 + $0xc] sm:$0xf] }
  0x25   : > { %3625 = vmatmul.mubr.msk.bf16.gmra.mrb[8].mxu1 %vm318_vm1, %v4311_v27  ;;  %v3281_v44 = vld [vmem:[%s4269_s28 + $0x112] sm:$0xff]  ;;  %v225_v56 = vld [vmem:[%s4269_s28 + $0x48] sm:$0xff]  ;;  %v227_v59 = vld [vmem:[%s4269_s28 + $0x60] sm:$0xff] }
  0x26   : > { %3761 = vmatmul.mubr.msk.bf16.gmra.mrb[8].mxu0 %vm318_vm1, %v4325_v32  ;;  %3628 = vmatprep.mubr.msk.bf16.mxu1 %vm318_vm1, %v4325_v32  ;;  %v4470_v54 = vpack.c.bf16 %v3281_v44, %v3280_v43  ;;  %v226_v57 = vld [vmem:[%s4269_s28 + $0x50] sm:$0xff]  ;;  %v3282_v21 = vld [vmem:[%s4269_s28 + $0x122] sm:$0xff]  ;;  %v3284_v61 = vld [vmem:[%s4269_s28 + $0x13a] sm:$0xff] }
  0x27   : > { %3764 = vmatprep.mubr.msk.bf16.mxu0 %vm318_vm1, %v4327_v33  ;;  %v3283_v58 = vld [vmem:[%s4269_s28 + $0x12a] sm:$0xff]  ;;  %v3285_v4 = vld [vmem:[%s4269_s28 + $0x142] sm:$0xff]  ;;  %v4495_v5 = vpack.c.bf16 %v226_v57, %v225_v56  ;;  %v229_v9 = vld [vmem:[%s4269_s28 + $0x78] sm:$0xff] }
  0x28   : > { %v228_v60 = vld [vmem:[%s4269_s28 + $0x68] sm:$0xff]  ;;  %v4497_v6 = vpack.c.bf16 %v3283_v58, %v3282_v21  ;;  %v4501_v8 = vpack.c.bf16 %v3285_v4, %v3284_v61  ;;  %v230_v10 = vld [vmem:[%s4269_s28 + $0x80] sm:$0xff]  ;;  %v3286_v11 = vld [vmem:[%s4269_s28 + $0x152] sm:$0xff]  ;;  %v2315_v61 = vsel %vm367_vm0, %v4375_v53, 0 }
  0x29   : > { %v4499_v7 = vpack.c.bf16 %v228_v60, %v227_v59  ;;  %v3287_v17 = vld [vmem:[%s4269_s28 + $0x15a] sm:$0xff]  ;;  %v231_v18 = vld [vmem:[%s4269_s28 + $0x90] sm:$0xff]  ;;  %v4519_v24 = vpack.c.bf16 %v230_v10, %v229_v9  ;;  %v233_v35 = vld [vmem:[%s4269_s28 + $0xa8] sm:$0xff] }
  0x2a   : > { %v232_v20 = vld [vmem:[%s4269_s28 + $0x98] sm:$0xff]  ;;  %v3288_v22 = vld [vmem:[%s4269_s28 + $0x16a] sm:$0xff]  ;;  %v4521_v25 = vpack.c.bf16 %v3287_v17, %v3286_v11  ;;  %v3290_v37 = vld [vmem:[%s4269_s28 + $0x182] sm:$0xff] }
  0x2b   : > { %v3289_v23 = vld [vmem:[%s4269_s28 + $0x172] sm:$0xff]  ;;  %v4523_v28 = vpack.c.bf16 %v232_v20, %v231_v18  ;;  %v3291_v40 = vld [vmem:[%s4269_s28 + $0x18a] sm:$0xff]  ;;  %v238_v57 = vld [vmem:[%s4269_s28 + $0xe0] sm:$0xff] }
  0x2c   : > { %v234_v36 = vld [vmem:[%s4269_s28 + $0xb0] sm:$0xff]  ;;  %v4543_v44 = vpack.c.bf16 %v3291_v40, %v3290_v37  ;;  %v237_v56 = vld [vmem:[%s4269_s28 + $0xd8] sm:$0xff]  ;;  %v3439_v4 = vld [vmem:[%s4963_s1 + $0x20] sm:$0xf] }
  0x2d   : > { %3629 = vmatmul.mubr.msk.bf16.gmra.mrb[12].mxu1 %vm318_vm1, %v4327_v33  ;;  %v4541_v43 = vpack.c.bf16 %v234_v36, %v233_v35  ;;  %v239_v21 = vld [vmem:[%s4269_s28 + $0xf0] sm:$0xff]  ;;  %v240_v58 = vld [vmem:[%s4269_s28 + $0xf8] sm:$0xff]  ;;  %v4559_v59 = vpack.c.bf16 %v238_v57, %v237_v56  ;;  %v241_v9 = vld [vmem:[%s4269_s28 + $0x108] sm:$0xff] }
  0x2e   : > { %3765 = vmatmul.mubr.msk.bf16.gmra.mrb[12].mxu0 %vm318_vm1, %v4341_v38  ;;  %3632 = vmatprep.mubr.msk.bf16.mxu1 %vm318_vm1, %v4341_v38  ;;  %v4561_v60 = vpack.c.bf16 %v240_v58, %v239_v21  ;;  %v242_v10 = vld [vmem:[%s4269_s28 + $0x110] sm:$0xff]  ;;  %v244_v11 = vld [vmem:[%s4269_s28 + $0x128] sm:$0xff]  ;;  %v245_v20 = vld [vmem:[%s4269_s28 + $0x138] sm:$0xff]  ;;  %v1138_v58 = vsel %vm367_vm0, %v4477_v55, 0 }
  0x2f   : > { %3786 = vmatprep.mubr.msk.bf16.mxu0 %vm318_vm1, %v4343_v39  ;;  %v4581_v17 = vpack.c.bf16 %v242_v10, %v241_v9  ;;  %v248_v35 = vld [vmem:[%s4269_s28 + $0x158] sm:$0xff]  ;;  %v249_v40 = vld [vmem:[%s4269_s28 + $0x168] sm:$0xff]  ;;  %v3340_v9 = vld [vmem:[%s4269_s28 + $0x1a0] sm:$0xff] }
  0x30   : > { %v745_v56 = vld [vmem:[%s4269_s28 + $0xa] sm:$0xff] }
  0x35   : > { %3633 = vmatmul.mubr.msk.bf16.gmra.mrb[16].mxu1 %vm318_vm1, %v4361_v48 }
  0x36   : > { %3787 = vmatmul.mubr.msk.bf16.vlgmr.msra.gmra.mrb[0].mxu0 %vm318_vm1, %v4363_v49  ;;  %3636 = vmatprep.mubr.msk.bf16.mxu1 %vm318_vm1, %v4365_v50 }
  0x37   : > { %3819 = vmatpush3.bf16.msra.mxu0 %v2021_v52  ;;  %3790 = vmatprep.mubr.msk.bf16.mxu0 %vm318_vm1, %v4367_v51  ;;  %v4468_v52 = vpack.c.bf16 %v224_v42, %v223_v41  ;;  %v235_v41 = vld [vmem:[%s4269_s28 + $0xc0] sm:$0xff]  ;;  %v236_v42 = vld [vmem:[%s4269_s28 + $0xc8] sm:$0xff] }
  0x38   : > { %4186 = vmatprep.subr.msk.bf16.mxu0 %vm367_vm0, %v4375_v53  ;;  %v243_v53 = vld [vmem:[%s4269_s28 + $0x120] sm:$0xff] }
  0x39   : > { %v4583_v18 = vpack.c.bf16 %v244_v11, %v243_v53  ;;  %v2609_v53 = vsel %vm367_vm0, %v3439_v4, 0 }
  0x3d   : > { %3637 = vmatmul.mubr.msk.bf16.gmra.mrb[20].mxu1 %vm318_vm1, %v4393_v62 }
  0x3e   : > { %3791 = vmatmul.mubr.msk.bf16.gmra.mrb[4].mxu0 %vm318_vm1, %v4395_v63  ;;  %3640 = vmatprep.mubr.msk.bf16.mxu1 %vm318_vm1, %v4397_v0 }
  0x3f   : > { %3794 = vmatprep.mubr.msk.bf16.mxu0 %vm318_vm1, %v4399_v2 }
  0x45   : > { %3641 = vmatmul.mubr.msk.bf16.gmra.mrb[24].mxu1 %vm318_vm1, %v4417_v12 }
  0x46   : > { %3795 = vmatmul.mubr.msk.bf16.gmra.mrb[8].mxu0 %vm318_vm1, %v4419_v13  ;;  %3644 = vmatprep.mubr.msk.bf16.mxu1 %vm318_vm1, %v4421_v14 }
  0x47   : > { %3798 = vmatprep.mubr.msk.bf16.mxu0 %vm318_vm1, %v4423_v16 }
  0x4d   : > { %3645 = vmatmul.mubr.msk.bf16.gmra.mrb[28].mxu1 %vm318_vm1, %v4441_v29 }
  0x4e   : > { %3799 = vmatmul.mubr.msk.bf16.gmra.mrb[12].mxu0 %vm318_vm1, %v4443_v30  ;;  %3650 = vmatprep.mubr.msk.bf16.mxu1 %vm318_vm1, %v251_v31  ;;  %v4525_v31 = vpack.c.bf16 %v3289_v23, %v3288_v22  ;;  %v246_v22 = vld [vmem:[%s4269_s28 + $0x140] sm:$0xff]  ;;  %v247_v23 = vld [vmem:[%s4269_s28 + $0x150] sm:$0xff] }
  0x4f   : > { %3802 = vmatprep.mubr.msk.bf16.mxu0 %vm318_vm1, %v4445_v34  ;;  %v4597_v36 = vpack.c.bf16 %v246_v22, %v245_v20  ;;  %v4599_v37 = vpack.c.bf16 %v248_v35, %v247_v23  ;;  %v2942_v20 = vld [vmem:[%s4816_s20 + $0x18] sm:$0xff] }
  0x55   : > { %3651 = vmatmul.mubr.msk.bf16.vlgmr.msra.gmra.mrb[0].mxu1 %vm318_vm1, %v4462_v45 }
  0x56   : > { %3683 = vmatpush3.bf16.msra.mxu1 %v843_v47  ;;  %3803 = vmatmul.mubr.msk.bf16.gmra.mrb[16].mxu0 %vm318_vm1, %v4464_v46  ;;  %v4545_v47 = vpack.c.bf16 %v236_v42, %v235_v41  ;;  %v250_v41 = vld [vmem:[%s4269_s28 + $0x170] sm:$0xff]  ;;  %v744_v42 = vld [vmem:[%s4269_s28 + $0x2] sm:$0xff] }
  0x57   : > { %3654 = vmatprep.mubr.msk.bf16.mxu1 %vm318_vm1, %v4468_v52  ;;  %3806 = vmatprep.mubr.msk.bf16.mxu0 %vm318_vm1, %v4470_v54  ;;  %v4613_v57 = vpack.c.bf16 %v250_v41, %v249_v40  ;;  %v776_v21 = vpack.c.bf16 %v745_v56, %v744_v42 }
  0x58   : > { %4181 = vmatprep.subr.msk.bf16.mxu1 %vm367_vm0, %v4477_v55  ;;  %v3338_v55 = vld [vmem:[%s4269_s28 + $0x188] sm:$0xff] }
  0x5d   : > { %3655 = vmatmul.mubr.msk.bf16.gmra.mrb[4].mxu1 %vm318_vm1, %v4495_v5 }
  0x5e   : > { %3807 = vmatmul.mubr.msk.bf16.gmra.mrb[20].mxu0 %vm318_vm1, %v4497_v6  ;;  %3658 = vmatprep.mubr.msk.bf16.mxu1 %vm318_vm1, %v4499_v7 }
  0x5f   : > { %3810 = vmatprep.mubr.msk.bf16.mxu0 %vm318_vm1, %v4501_v8 }
  0x65   : > { %3659 = vmatmul.mubr.msk.bf16.gmra.mrb[8].mxu1 %vm318_vm1, %v4519_v24 }
  0x66   : > { %3811 = vmatmul.mubr.msk.bf16.gmra.mrb[24].mxu0 %vm318_vm1, %v4521_v25  ;;  %3662 = vmatprep.mubr.msk.bf16.mxu1 %vm318_vm1, %v4523_v28 }
  0x67   : > { %3814 = vmatprep.mubr.msk.bf16.mxu0 %vm318_vm1, %v4525_v31 }
  0x6d   : > { %3663 = vmatmul.mubr.msk.bf16.gmra.mrb[12].mxu1 %vm318_vm1, %v4541_v43 }
  0x6e   : > { %3815 = vmatmul.mubr.msk.bf16.gmra.mrb[28].mxu0 %vm318_vm1, %v4543_v44  ;;  %3666 = vmatprep.mubr.msk.bf16.mxu1 %vm318_vm1, %v4545_v47 }
  0x6f   : > { %3820 = vmatprep.mubr.msk.bf16.mxu0 %vm318_vm1, %v4468_v52 }
  0x75   : > { %3667 = vmatmul.mubr.msk.bf16.gmra.mrb[16].mxu1 %vm318_vm1, %v4559_v59 }
  0x76   : > { %3821 = vmatmul.mubr.msk.bf16.vlgmr.msra.gmra.mrb[0].mxu0 %vm318_vm1, %v4495_v5  ;;  %3670 = vmatprep.mubr.msk.bf16.mxu1 %vm318_vm1, %v4561_v60 }
  0x77   : > { %3853 = vmatpush3.bf16.msra.mxu0 %v2315_v61  ;;  %3824 = vmatprep.mubr.msk.bf16.mxu0 %vm318_vm1, %v4499_v7 }
  0x78   : > { %4187 = vmatprep.subr.msk.bf16.mxu0 %vm367_vm0, %v3439_v4  ;;  %v2939_v4 = vld [vmem:[%s4816_s20] sm:$0xff] }
  0x7d   : > { %3671 = vmatmul.mubr.msk.bf16.gmra.mrb[20].mxu1 %vm318_vm1, %v4581_v17 }
  0x7e   : > { %3825 = vmatmul.mubr.msk.bf16.gmra.mrb[4].mxu0 %vm318_vm1, %v4519_v24  ;;  %3674 = vmatprep.mubr.msk.bf16.mxu1 %vm318_vm1, %v4583_v18 }
  0x7f   : > { %3828 = vmatprep.mubr.msk.bf16.mxu0 %vm318_vm1, %v4523_v28 }
  0x85   : > { %3675 = vmatmul.mubr.msk.bf16.gmra.mrb[24].mxu1 %vm318_vm1, %v4597_v36 }
  0x86   : > { %3829 = vmatmul.mubr.msk.bf16.gmra.mrb[8].mxu0 %vm318_vm1, %v4541_v43  ;;  %3678 = vmatprep.mubr.msk.bf16.mxu1 %vm318_vm1, %v4599_v37 }
  0x87   : > { %3832 = vmatprep.mubr.msk.bf16.mxu0 %vm318_vm1, %v4545_v47 }
  0x8d   : > { %3679 = vmatmul.mubr.msk.bf16.gmra.mrb[28].mxu1 %vm318_vm1, %v4613_v57 }
  0x8e   : > { %3833 = vmatmul.mubr.msk.bf16.gmra.mrb[12].mxu0 %vm318_vm1, %v4559_v59  ;;  %3684 = vmatprep.mubr.msk.bf16.mxu1 %vm318_vm1, %v776_v21 }
  0x8f   : > { %3836 = vmatprep.mubr.msk.bf16.mxu0 %vm318_vm1, %v4561_v60 }
  0x95   : > { %3685 = vmatmul.mubr.msk.bf16.vlgmr.msra.gmra.mrb[0].mxu1 %vm318_vm1, %v4343_v39  ;;  %v3337_v39 = vld [vmem:[%s4269_s28 + $0x180] sm:$0xff] }
  0x96   : > { %3717 = vmatpush3.bf16.msra.mxu1 %v1138_v58  ;;  %3837 = vmatmul.mubr.msk.bf16.gmra.mrb[16].mxu0 %vm318_vm1, %v4581_v17  ;;  %v4644_v61 = vpack.c.bf16 %v3338_v55, %v3337_v39 }
  0x97   : > { %3688 = vmatprep.mubr.msk.bf16.mxu1 %vm318_vm1, %v4363_v49  ;;  %3840 = vmatprep.mubr.msk.bf16.mxu0 %vm318_vm1, %v4583_v18 }
  0x98   : > { %4183 = vmatprep.subr.msk.bf16.mxu1 %vm367_vm0, %v4244_v1  ;;  %v3339_v1 = vld [vmem:[%s4269_s28 + $0x198] sm:$0xff] }
  0x99   : > { %v1969_v10 = vpack.c.bf16 %v3340_v9, %v3339_v1 }
  0x9d   : > { %3689 = vmatmul.mubr.msk.bf16.gmra.mrb[4].mxu1 %vm318_vm1, %v4367_v51 }
  0x9e   : > { %3841 = vmatmul.mubr.msk.bf16.gmra.mrb[20].mxu0 %vm318_vm1, %v4597_v36  ;;  %3692 = vmatprep.mubr.msk.bf16.mxu1 %vm318_vm1, %v4395_v63 }
  0x9f   : > { %3844 = vmatprep.mubr.msk.bf16.mxu0 %vm318_vm1, %v4599_v37 }
  0xa5   : > { %3693 = vmatmul.mubr.msk.bf16.gmra.mrb[8].mxu1 %vm318_vm1, %v4399_v2 }
  0xa6   : > { %3845 = vmatmul.mubr.msk.bf16.gmra.mrb[24].mxu0 %vm318_vm1, %v4613_v57  ;;  %3696 = vmatprep.mubr.msk.bf16.mxu1 %vm318_vm1, %v4419_v13 }
  0xa7   : > { %3848 = vmatprep.mubr.msk.bf16.mxu0 %vm318_vm1, %v4644_v61 }
  0xad   : > { %3697 = vmatmul.mubr.msk.bf16.gmra.mrb[12].mxu1 %vm318_vm1, %v4423_v16 }
  0xae   : > { %3849 = vmatmul.mubr.msk.bf16.gmra.mrb[28].mxu0 %vm318_vm1, %v1969_v10  ;;  %3700 = vmatprep.mubr.msk.bf16.mxu1 %vm318_vm1, %v4443_v30 }
  0xaf   : > { %3854 = vmatprep.mubr.msk.bf16.mxu0 %vm318_vm1, %v4278_v15  ;;  %v3387_v15 = vld [vmem:[%s4269_s28 + $0x189] sm:$0xff] }
  0xb5   : > { %3701 = vmatmul.mubr.msk.bf16.gmra.mrb[16].mxu1 %vm318_vm1, %v4445_v34 }
  0xb6   : > { %3855 = vmatmul.mubr.msk.bf16.vlgmr.msra.gmra.mrb[0].mxu0 %vm318_vm1, %v4284_v19  ;;  %3704 = vmatprep.mubr.msk.bf16.mxu1 %vm318_vm1, %v4464_v46 }
  0xb7   : > { %3887 = vmatpush3.bf16.msra.mxu0 %v2609_v53  ;;  %3858 = vmatprep.mubr.msk.bf16.mxu0 %vm318_vm1, %v4309_v26  ;;  %v3388_v26 = vld [vmem:[%s4269_s28 + $0x199] sm:$0xff] }
  0xbd   : > { %3705 = vmatmul.mubr.msk.bf16.gmra.mrb[20].mxu1 %vm318_vm1, %v4470_v54 }
  0xbe   : > { %3859 = vmatmul.mubr.msk.bf16.gmra.mrb[4].mxu0 %vm318_vm1, %v4311_v27  ;;  %3708 = vmatprep.mubr.msk.bf16.mxu1 %vm318_vm1, %v4497_v6  ;;  %v3389_v27 = vld [vmem:[%s4269_s28 + $0x1a1] sm:$0xff] }
  0xbf   : > { %3862 = vmatprep.mubr.msk.bf16.mxu0 %vm318_vm1, %v4325_v32  ;;  %v2263_v32 = vpack.c.bf16 %v3389_v27, %v3388_v26  ;;  %v2943_v27 = vld [vmem:[%s4816_s20 + $0x20] sm:$0xff] }
  0xc5   : > { %3709 = vmatmul.mubr.msk.bf16.gmra.mrb[24].mxu1 %vm318_vm1, %v4501_v8 }
  0xc6   : > { %3863 = vmatmul.mubr.msk.bf16.gmra.mrb[8].mxu0 %vm318_vm1, %v4327_v33  ;;  %3712 = vmatprep.mubr.msk.bf16.mxu1 %vm318_vm1, %v4521_v25  ;;  %v3437_v33 = vld [vmem:[%s4269_s28 + $0x19a] sm:$0xff] }
  0xc7   : > { %3866 = vmatprep.mubr.msk.bf16.mxu0 %vm318_vm1, %v4341_v38  ;;  %v3438_v38 = vld [vmem:[%s4269_s28 + $0x1a2] sm:$0xff] }
  0xcd   : > { %3713 = vmatmul.mubr.msk.bf16.gmra.mrb[28].mxu1 %vm318_vm1, %v4525_v31 }
  0xce   : > { %3867 = vmatmul.mubr.msk.bf16.gmra.mrb[12].mxu0 %vm318_vm1, %v4361_v48  ;;  %3718 = vmatprep.mubr.msk.bf16.mxu1 %vm318_vm1, %v4462_v45 }
  0xcf   : > { %3870 = vmatprep.mubr.msk.bf16.mxu0 %vm318_vm1, %v4365_v50 }
  0xd5   : > { %3719 = vmatmul.mubr.msk.bf16.vlgmr.msra.gmra.mrb[0].mxu1 %vm318_vm1, %v4468_v52 }
  0xd6   : > { %3921 = vmatpush3.bf16.msra.mxu1 %v4252_v3  ;;  %3871 = vmatmul.mubr.msk.bf16.gmra.mrb[16].mxu0 %vm318_vm1, %v4393_v62  ;;  %v3386_v3 = vld [vmem:[%s4269_s28 + $0x181] sm:$0xff] }
  0xd7   : > { %3722 = vmatprep.mubr.msk.bf16.mxu1 %vm318_vm1, %v4495_v5  ;;  %3874 = vmatprep.mubr.msk.bf16.mxu0 %vm318_vm1, %v4397_v0  ;;  %v2262_v19 = vpack.c.bf16 %v3387_v15, %v3386_v3  ;;  %v2945_v15 = vld [vmem:[%s4816_s20 + $0x30] sm:$0xff] }
  0xdd   : > { %3723 = vmatmul.mubr.msk.bf16.gmra.mrb[4].mxu1 %vm318_vm1, %v4499_v7 }
  0xde   : > { %3875 = vmatmul.mubr.msk.bf16.gmra.mrb[20].mxu0 %vm318_vm1, %v4417_v12  ;;  %3726 = vmatprep.mubr.msk.bf16.mxu1 %vm318_vm1, %v4519_v24 }
  0xdf   : > { %3878 = vmatprep.mubr.msk.bf16.mxu0 %vm318_vm1, %v4421_v14 }
  0xe5   : > { %3727 = vmatmul.mubr.msk.bf16.gmra.mrb[8].mxu1 %vm318_vm1, %v4523_v28 }
  0xe6   : > { %3879 = vmatmul.mubr.msk.bf16.gmra.mrb[24].mxu0 %vm318_vm1, %v4441_v29  ;;  %3730 = vmatprep.mubr.msk.bf16.mxu1 %vm318_vm1, %v4541_v43 }
  0xe7   : > { %3882 = vmatprep.mubr.msk.bf16.mxu0 %vm318_vm1, %v2262_v19 }
  0xed   : > { %3731 = vmatmul.mubr.msk.bf16.gmra.mrb[12].mxu1 %vm318_vm1, %v4545_v47  ;;  %v2941_v47 = vld [vmem:[%s4816_s20 + $0x10] sm:$0xff] }
  0xee   : > { %3883 = vmatmul.mubr.msk.bf16.gmra.mrb[28].mxu0 %vm318_vm1, %v2263_v32  ;;  %3734 = vmatprep.mubr.msk.bf16.mxu1 %vm318_vm1, %v4559_v59 }
  0xef   : > { %3888 = vmatprep.mubr.msk.bf16.mxu0 %vm318_vm1, %v4363_v49 }
  0xf5   : > { %3735 = vmatmul.mubr.msk.bf16.gmra.mrb[16].mxu1 %vm318_vm1, %v4561_v60 }
  0xf6   : > { %3889 = vmatmul.mubr.msk.bf16.vlgmr.msra.gmra.mrb[0].mxu0 %vm318_vm1, %v4367_v51  ;;  %3738 = vmatprep.mubr.msk.bf16.mxu1 %vm318_vm1, %v4581_v17 }
  0xf7   : > { %3892 = vmatprep.mubr.msk.bf16.mxu0 %vm318_vm1, %v4395_v63 }
  0xfd   : > { %3739 = vmatmul.mubr.msk.bf16.gmra.mrb[20].mxu1 %vm318_vm1, %v4583_v18 }
  0xfe   : > { %3893 = vmatmul.mubr.msk.bf16.gmra.mrb[4].mxu0 %vm318_vm1, %v4399_v2  ;;  %3742 = vmatprep.mubr.msk.bf16.mxu1 %vm318_vm1, %v4597_v36  ;;  %v2940_v36 = vld [vmem:[%s4816_s20 + $0x8] sm:$0xff] }
  0xff   : > { %3896 = vmatprep.mubr.msk.bf16.mxu0 %vm318_vm1, %v4419_v13 }
 0x105   : > { %3743 = vmatmul.mubr.msk.bf16.gmra.mrb[24].mxu1 %vm318_vm1, %v4599_v37 }
 0x106   : > { %3897 = vmatmul.mubr.msk.bf16.gmra.mrb[8].mxu0 %vm318_vm1, %v4423_v16  ;;  %3746 = vmatprep.mubr.msk.bf16.mxu1 %vm318_vm1, %v4613_v57 }
 0x107   : > { %3900 = vmatprep.mubr.msk.bf16.mxu0 %vm318_vm1, %v4443_v30 }
 0x10d   : > { %3747 = vmatmul.mubr.msk.bf16.gmra.mrb[28].mxu1 %vm318_vm1, %v4644_v61 }
 0x10e   : > { %3901 = vmatmul.mubr.msk.bf16.gmra.mrb[12].mxu0 %vm318_vm1, %v4445_v34  ;;  %3768 = vmatprep.mubr.msk.bf16.mxu1 %vm318_vm1, %v4361_v48  ;;  %v2557_v48 = vpack.c.bf16 %v3438_v38, %v3437_v33 }
 0x10f   : > { %3904 = vmatprep.mubr.msk.bf16.mxu0 %vm318_vm1, %v4464_v46 }
 0x115   : > { %3769 = vmatmul.mubr.msk.bf16.vlgmr.msra.gmra.mrb[16].mxu1 %vm318_vm1, %v4365_v50 }
 0x116   : > { %3905 = vmatmul.mubr.msk.bf16.gmra.mrb[16].mxu0 %vm318_vm1, %v4470_v54  ;;  %3772 = vmatprep.mubr.msk.bf16.mxu1 %vm318_vm1, %v4393_v62  ;;  %v4811_v54 = vld [vmem:[%s4964_s2] ss:$0 sm:$0xff] }
 0x117   : > { %3908 = vmatprep.mubr.msk.bf16.mxu0 %vm318_vm1, %v4497_v6 }
 0x11d   : > { %3773 = vmatmul.mubr.msk.bf16.gmra.mrb[20].mxu1 %vm318_vm1, %v4397_v0 }
 0x11e   : > { %3909 = vmatmul.mubr.msk.bf16.gmra.mrb[20].mxu0 %vm318_vm1, %v4501_v8  ;;  %3776 = vmatprep.mubr.msk.bf16.mxu1 %vm318_vm1, %v4417_v12 }
 0x11f   : > { %3912 = vmatprep.mubr.msk.bf16.mxu0 %vm318_vm1, %v4521_v25 }
 0x125   : > { %3777 = vmatmul.mubr.msk.bf16.gmra.mrb[24].mxu1 %vm318_vm1, %v4421_v14 }
 0x126   : > { %3913 = vmatmul.mubr.msk.bf16.gmra.mrb[24].mxu0 %vm318_vm1, %v4525_v31  ;;  %3780 = vmatprep.mubr.msk.bf16.mxu1 %vm318_vm1, %v4441_v29 }
 0x127   : > { %3916 = vmatprep.mubr.msk.bf16.mxu0 %vm318_vm1, %v4543_v44 }
 0x12d   : > { %3781 = vmatmul.mubr.msk.bf16.gmra.mrb[28].mxu1 %vm318_vm1, %v2262_v19 }
 0x12e   : > { %3917 = vmatmul.mubr.msk.bf16.gmra.mrb[28].mxu0 %vm318_vm1, %v2557_v48  ;;  %v2946_v48 = vld [vmem:[%s4816_s20 + $0x38] sm:$0xff] }
 0x1a8   : > { %v3720_v49 = vpop.f32.mrb[0].mxu1 }
 0x1a9   : > { %v1174_v50 = vpop.f32.mrb[1].mxu1 }
 0x1aa   : > { %v3721_v51 = vpop.f32.mrb[2].mxu1 }
 0x1ab   : > { %v1177_v62 = vpop.f32.mrb[3].mxu1 }
 0x1b0   : > { %v3724_v63 = vpop.f32.mrb[4].mxu1 }
 0x1b1   : > { %v1190_v0 = vpop.f32.mrb[5].mxu1 }
 0x1b2   : > { %v3725_v2 = vpop.f32.mrb[6].mxu1 }
 0x1b3   : > { %v1193_v12 = vpop.f32.mrb[7].mxu1 }
 0x1b8   : > { %v4791_v13 = vpop.f32.mrb[8].mxu1 }
 0x1b9   : > { %v4793_v14 = vpop.f32.mrb[9].mxu1 }
 0x1ba   : > { %v4795_v16 = vpop.f32.mrb[10].mxu1 }
 0x1bb   : > { %v4797_v29 = vpop.f32.mrb[11].mxu1 }
 0x1c0   : > { %v4799_v30 = vpop.f32.mrb[12].mxu1 }
 0x1c1   : > { %v4801_v34 = vpop.f32.mrb[13].mxu1 }
 0x1c2   : > { %v4803_v45 = vpop.f32.mrb[14].mxu1 }
 0x1c3   : > { %v4805_v46 = vpop.f32.mrb[15].mxu1 }
 0x1c9   : > { %v3890_v52 = vpop.f32.mrb[0].mxu0 }
 0x1ca   : > { %v3922_v5 = vadd.f32 %v3890_v52, %v3720_v49  ;;  %v2645_v6 = vpop.f32.mrb[1].mxu0 }
 0x1cb   : > { %v3923_v7 = vadd.f32 %v2645_v6, %v1174_v50  ;;  %v3891_v8 = vpop.f32.mrb[2].mxu0 }
 0x1cc   : > { %v2813_v24 = vadd.f32 %v3922_v5, %v4811_v54  ;;  %v3924_v25 = vadd.f32 %v3891_v8, %v3721_v51  ;;  %v2648_v28 = vpop.f32.mrb[3].mxu0 }
 0x1cd   : > { %v2811_v31 = vadd.f32 %v3923_v7, %v4811_v54  ;;  %v3925_v43 = vadd.f32 %v2648_v28, %v1177_v62  ;;  %v2944_v62 = vld [vmem:[%s4816_s20 + $0x28] sm:$0xff] }
 0x1ce   : > { %vm2845_vm2 = vcmp.gt.f32.partialorder %v2813_v24, 0.0  ;;  %v2877_v44 = vmul.f32 0.2, %v2813_v24  ;;  %v2814_v59 = vadd.f32 %v3924_v25, %v4811_v54 }
 0x1cf   : > { %vm2843_vm3 = vcmp.gt.f32.partialorder %v2811_v31, 0.0  ;;  %v2875_v60 = vmul.f32 0.2, %v2811_v31  ;;  %v2812_v11 = vadd.f32 %v3925_v43, %v4811_v54 }
 0x1d0   : > { %v2909_v17 = vsel %vm2845_vm2, %v2813_v24, %v2877_v44  ;;  %vm2846_vm4 = vcmp.gt.f32.partialorder %v2814_v59, 0.0  ;;  %v2878_v18 = vmul.f32 0.2, %v2814_v59  ;;  %v2949_v44 = vld [vmem:[%s4816_s20 + $0x50] sm:$0xff] }
 0x1d1   : > { %v2973_v22 = vadd.f32 %v2941_v47, %v2909_v17  ;;  %v2907_v23 = vsel %vm2843_vm3, %v2811_v31, %v2875_v60  ;;  %vm2844_vm5 = vcmp.gt.f32.partialorder %v2812_v11, 0.0  ;;  %v2876_v35 = vmul.f32 0.2, %v2812_v11  ;;  %v3894_v37 = vpop.f32.mrb[4].mxu0  ;;  %v2947_v60 = vld [vmem:[%s4816_s20 + $0x40] sm:$0xff]  ;;  %v2950_v17 = vld [vmem:[%s4816_s20 + $0x58] sm:$0xff] }
 0x1d2   : > { %v2971_v40 = vadd.f32 %v2939_v4, %v2907_v23  ;;  %v2910_v41 = vsel %vm2846_vm4, %v2814_v59, %v2878_v18  ;;  %v3926_v42 = vadd.f32 %v3894_v37, %v3724_v63  ;;  %v2661_v56 = vpop.f32.mrb[5].mxu0 }
 0x1d3   : > { %3005 = vst.msk [vmem:[%s4827_s22 + $0x10] sm:$0xff] %vm318_vm1, %v2973_v22  ;;  %v2974_v57 = vadd.f32 %v2942_v20, %v2910_v41  ;;  %v2908_v21 = vsel %vm2844_vm5, %v2812_v11, %v2876_v35  ;;  %v3927_v58 = vadd.f32 %v2661_v56, %v1190_v0  ;;  %v3895_v39 = vpop.f32.mrb[6].mxu0  ;;  %v2948_v22 = vld [vmem:[%s4816_s20 + $0x48] sm:$0xff] }
 0x1d4   : > { %3003 = vst.msk [vmem:[%s4827_s22] sm:$0xff] %vm318_vm1, %v2971_v40  ;;  %v2972_v55 = vadd.f32 %v2940_v36, %v2908_v21  ;;  %v2817_v61 = vadd.f32 %v3926_v42, %v4811_v54  ;;  %v3928_v1 = vadd.f32 %v3895_v39, %v3725_v2  ;;  %v2664_v9 = vpop.f32.mrb[7].mxu0 }
 0x1d5   : > { %3006 = vst.msk [vmem:[%s4827_s22 + $0x18] sm:$0xff] %vm318_vm1, %v2974_v57  ;;  %v2815_v10 = vadd.f32 %v3927_v58, %v4811_v54  ;;  %v3929_v53 = vadd.f32 %v2664_v9, %v1193_v12 }
 0x1d6   : > { %3004 = vst.msk [vmem:[%s4827_s22 + $0x8] sm:$0xff] %vm318_vm1, %v2972_v55  ;;  %vm2849_vm6 = vcmp.gt.f32.partialorder %v2817_v61, 0.0  ;;  %v2881_v3 = vmul.f32 0.2, %v2817_v61  ;;  %v2818_v19 = vadd.f32 %v3928_v1, %v4811_v54  ;;  %v2953_v1 = vld [vmem:[%s4816_s20 + $0x70] sm:$0xff] }
 0x1d7   : > { %vm2847_vm7 = vcmp.gt.f32.partialorder %v2815_v10, 0.0  ;;  %v2879_v26 = vmul.f32 0.2, %v2815_v10  ;;  %v2816_v32 = vadd.f32 %v3929_v53, %v4811_v54  ;;  %v2951_v53 = vld [vmem:[%s4816_s20 + $0x60] sm:$0xff] }
 0x1d8   : > { %v2913_v33 = vsel %vm2849_vm6, %v2817_v61, %v2881_v3  ;;  %vm2850_vm8 = vcmp.gt.f32.partialorder %v2818_v19, 0.0  ;;  %v2882_v38 = vmul.f32 0.2, %v2818_v19 }
 0x1d9   : > { %v2977_v49 = vadd.f32 %v2945_v15, %v2913_v33  ;;  %v2911_v50 = vsel %vm2847_vm7, %v2815_v10, %v2879_v26  ;;  %vm2848_vm9 = vcmp.gt.f32.partialorder %v2816_v32, 0.0  ;;  %v2880_v51 = vmul.f32 0.2, %v2816_v32  ;;  %v3898_v63 = vpop.f32.mrb[8].mxu0  ;;  %v2952_v33 = vld [vmem:[%s4816_s20 + $0x68] sm:$0xff] }
 0x1da   : > { %v2975_v0 = vadd.f32 %v2943_v27, %v2911_v50  ;;  %v2914_v2 = vsel %vm2850_vm8, %v2818_v19, %v2882_v38  ;;  %v3930_v12 = vadd.f32 %v3898_v63, %v4791_v13  ;;  %v2677_v52 = vpop.f32.mrb[9].mxu0  ;;  %v2954_v19 = vld [vmem:[%s4816_s20 + $0x78] sm:$0xff] }
 0x1db   : > { %3009 = vst.msk [vmem:[%s4827_s22 + $0x30] sm:$0xff] %vm318_vm1, %v2977_v49  ;;  %v2978_v5 = vadd.f32 %v2946_v48, %v2914_v2  ;;  %v2912_v6 = vsel %vm2848_vm9, %v2816_v32, %v2880_v51  ;;  %v3931_v7 = vadd.f32 %v2677_v52, %v4793_v14  ;;  %v3899_v8 = vpop.f32.mrb[10].mxu0 }
 0x1dc   : > { %3007 = vst.msk [vmem:[%s4827_s22 + $0x20] sm:$0xff] %vm318_vm1, %v2975_v0  ;;  %v2976_v24 = vadd.f32 %v2944_v62, %v2912_v6  ;;  %v2821_v25 = vadd.f32 %v3930_v12, %v4811_v54  ;;  %v3932_v28 = vadd.f32 %v3899_v8, %v4795_v16  ;;  %v2680_v31 = vpop.f32.mrb[11].mxu0 }
 0x1dd   : > { %3010 = vst.msk [vmem:[%s4827_s22 + $0x38] sm:$0xff] %vm318_vm1, %v2978_v5  ;;  %v2819_v13 = vadd.f32 %v3931_v7, %v4811_v54  ;;  %v3933_v43 = vadd.f32 %v2680_v31, %v4797_v29 }
 0x1de   : > { %3008 = vst.msk [vmem:[%s4827_s22 + $0x28] sm:$0xff] %vm318_vm1, %v2976_v24  ;;  %vm2853_vm10 = vcmp.gt.f32.partialorder %v2821_v25, 0.0  ;;  %v2885_v14 = vmul.f32 0.2, %v2821_v25  ;;  %v2822_v47 = vadd.f32 %v3932_v28, %v4811_v54 }
 0x1df   : > { %vm2851_vm11 = vcmp.gt.f32.partialorder %v2819_v13, 0.0  ;;  %v2883_v59 = vmul.f32 0.2, %v2819_v13  ;;  %v2820_v16 = vadd.f32 %v3933_v43, %v4811_v54 }
 0x1e0   : > { %v2917_v4 = vsel %vm2853_vm10, %v2821_v25, %v2885_v14  ;;  %vm2854_vm12 = vcmp.gt.f32.partialorder %v2822_v47, 0.0  ;;  %v2886_v11 = vmul.f32 0.2, %v2822_v47 }
 0x1e1   : > { %v2981_v29 = vadd.f32 %v2949_v44, %v2917_v4  ;;  %v2915_v18 = vsel %vm2851_vm11, %v2819_v13, %v2883_v59  ;;  %vm2852_vm13 = vcmp.gt.f32.partialorder %v2820_v16, 0.0  ;;  %v2884_v20 = vmul.f32 0.2, %v2820_v16  ;;  %v3902_v23 = vpop.f32.mrb[12].mxu0  ;;  %v2957_v13 = vld [vmem:[%s4816_s20 + $0x90] sm:$0xff]  ;;  %v2955_v44 = vld [vmem:[%s4816_s20 + $0x80] sm:$0xff] }
 0x1e2   : > { %v2979_v35 = vadd.f32 %v2947_v60, %v2915_v18  ;;  %v2918_v36 = vsel %vm2854_vm12, %v2822_v47, %v2886_v11  ;;  %v3934_v37 = vadd.f32 %v3902_v23, %v4799_v30  ;;  %v2693_v40 = vpop.f32.mrb[13].mxu0  ;;  %v2956_v18 = vld [vmem:[%s4816_s20 + $0x88] sm:$0xff] }
 0x1e3   : > { %3013 = vst.msk [vmem:[%s4827_s22 + $0x50] sm:$0xff] %vm318_vm1, %v2981_v29  ;;  %v2982_v41 = vadd.f32 %v2950_v17, %v2918_v36  ;;  %v2916_v42 = vsel %vm2852_vm13, %v2820_v16, %v2884_v20  ;;  %v3935_v56 = vadd.f32 %v2693_v40, %v4801_v34  ;;  %v3903_v57 = vpop.f32.mrb[14].mxu0  ;;  %v2958_v16 = vld [vmem:[%s4816_s20 + $0x98] sm:$0xff] }
 0x1e4   : > { %3011 = vst.msk [vmem:[%s4827_s22 + $0x40] sm:$0xff] %vm318_vm1, %v2979_v35  ;;  %v2980_v21 = vadd.f32 %v2948_v22, %v2916_v42  ;;  %v2825_v58 = vadd.f32 %v3934_v37, %v4811_v54  ;;  %v3936_v39 = vadd.f32 %v3903_v57, %v4803_v45  ;;  %v2696_v55 = vpop.f32.mrb[15].mxu0 }
 0x1e5   : > { %3014 = vst.msk [vmem:[%s4827_s22 + $0x58] sm:$0xff] %vm318_vm1, %v2982_v41  ;;  %v2823_v30 = vadd.f32 %v3935_v56, %v4811_v54  ;;  %v3937_v61 = vadd.f32 %v2696_v55, %v4805_v46 }
 0x1e6   : > { %3012 = vst.msk [vmem:[%s4827_s22 + $0x48] sm:$0xff] %vm318_vm1, %v2980_v21  ;;  %vm2857_vm14 = vcmp.gt.f32.partialorder %v2825_v58, 0.0  ;;  %v2889_v34 = vmul.f32 0.2, %v2825_v58  ;;  %v2826_v9 = vadd.f32 %v3936_v39, %v4811_v54 }
 0x1e7   : > { %vm2855_vm15 = vcmp.gt.f32.partialorder %v2823_v30, 0.0  ;;  %v2887_v10 = vmul.f32 0.2, %v2823_v30  ;;  %v2824_v45 = vadd.f32 %v3937_v61, %v4811_v54 }
 0x1e8   : > { %v2921_v3 = vsel %vm2857_vm14, %v2825_v58, %v2889_v34  ;;  %vm2858_vm0 = vcmp.gt.f32.partialorder %v2826_v9, 0.0  ;;  %v2890_v15 = vmul.f32 0.2, %v2826_v9  ;;  %v3770_v26 = vpop.f32.mrb[16].mxu1 }
 0x1e9   : > { %v2985_v46 = vadd.f32 %v2953_v1, %v2921_v3  ;;  %v2919_v27 = vsel %vm2855_vm15, %v2823_v30, %v2887_v10  ;;  %vm2856_vm2 = vcmp.gt.f32.partialorder %v2824_v45, 0.0  ;;  %v2888_v32 = vmul.f32 0.2, %v2824_v45  ;;  %v3906_v38 = vpop.f32.mrb[16].mxu0  ;;  %v1532_v48 = vpop.f32.mrb[17].mxu1 }
 0x1ea   : > { %v2983_v49 = vadd.f32 %v2951_v53, %v2919_v27  ;;  %v2922_v50 = vsel %vm2858_vm0, %v2826_v9, %v2890_v15  ;;  %v3938_v51 = vadd.f32 %v3906_v38, %v3770_v26  ;;  %v2709_v62 = vpop.f32.mrb[17].mxu0  ;;  %v3771_v63 = vpop.f32.mrb[18].mxu1  ;;  %v2961_v9 = vld [vmem:[%s4816_s20 + $0xb0] sm:$0xff]  ;;  %v2962_v26 = vld [vmem:[%s4816_s20 + $0xb8] sm:$0xff]  ;;  %v2960_v38 = vld [vmem:[%s4816_s20 + $0xa8] sm:$0xff] }
 0x1eb   : > { %3017 = vst.msk [vmem:[%s4827_s22 + $0x70] sm:$0xff] %vm318_vm1, %v2985_v46  ;;  %v2986_v0 = vadd.f32 %v2954_v19, %v2922_v50  ;;  %v2920_v2 = vsel %vm2856_vm2, %v2824_v45, %v2888_v32  ;;  %v3939_v12 = vadd.f32 %v2709_v62, %v1532_v48  ;;  %v3907_v52 = vpop.f32.mrb[18].mxu0  ;;  %v1535_v5 = vpop.f32.mrb[19].mxu1  ;;  %v2959_v45 = vld [vmem:[%s4816_s20 + $0xa0] sm:$0xff] }
 0x1ec   : > { %3015 = vst.msk [vmem:[%s4827_s22 + $0x60] sm:$0xff] %vm318_vm1, %v2983_v49  ;;  %v2984_v6 = vadd.f32 %v2952_v33, %v2920_v2  ;;  %v2829_v7 = vadd.f32 %v3938_v51, %v4811_v54  ;;  %v3940_v8 = vadd.f32 %v3907_v52, %v3771_v63  ;;  %v2712_v24 = vpop.f32.mrb[19].mxu0 }
 0x1ed   : > { %3018 = vst.msk [vmem:[%s4827_s22 + $0x78] sm:$0xff] %vm318_vm1, %v2986_v0  ;;  %v2827_v25 = vadd.f32 %v3939_v12, %v4811_v54  ;;  %v3941_v28 = vadd.f32 %v2712_v24, %v1535_v5 }
 0x1ee   : > { %3016 = vst.msk [vmem:[%s4827_s22 + $0x68] sm:$0xff] %vm318_vm1, %v2984_v6  ;;  %vm2861_vm3 = vcmp.gt.f32.partialorder %v2829_v7, 0.0  ;;  %v2893_v31 = vmul.f32 0.2, %v2829_v7  ;;  %v2830_v43 = vadd.f32 %v3940_v8, %v4811_v54 }
 0x1ef   : > { %vm2859_vm4 = vcmp.gt.f32.partialorder %v2827_v25, 0.0  ;;  %v2891_v14 = vmul.f32 0.2, %v2827_v25  ;;  %v2828_v47 = vadd.f32 %v3941_v28, %v4811_v54 }
 0x1f0   : > { %v2925_v59 = vsel %vm2861_vm3, %v2829_v7, %v2893_v31  ;;  %vm2862_vm5 = vcmp.gt.f32.partialorder %v2830_v43, 0.0  ;;  %v2894_v60 = vmul.f32 0.2, %v2830_v43  ;;  %v3774_v4 = vpop.f32.mrb[20].mxu1 }
 0x1f1   : > { %v2989_v11 = vadd.f32 %v2957_v13, %v2925_v59  ;;  %v2923_v17 = vsel %vm2859_vm4, %v2827_v25, %v2891_v14  ;;  %vm2860_vm6 = vcmp.gt.f32.partialorder %v2828_v47, 0.0  ;;  %v2892_v29 = vmul.f32 0.2, %v2828_v47  ;;  %v3910_v20 = vpop.f32.mrb[20].mxu0  ;;  %v1548_v22 = vpop.f32.mrb[21].mxu1 }
 0x1f2   : > { %v2987_v23 = vadd.f32 %v2955_v44, %v2923_v17  ;;  %v2926_v35 = vsel %vm2862_vm5, %v2830_v43, %v2894_v60  ;;  %v3942_v36 = vadd.f32 %v3910_v20, %v3774_v4  ;;  %v2725_v37 = vpop.f32.mrb[21].mxu0  ;;  %v3775_v40 = vpop.f32.mrb[22].mxu1  ;;  %v2965_v43 = vld [vmem:[%s4816_s20 + $0xd0] sm:$0xff]  ;;  %v2966_v4 = vld [vmem:[%s4816_s20 + $0xd8] sm:$0xff]  ;;  %v2964_v20 = vld [vmem:[%s4816_s20 + $0xc8] sm:$0xff] }
 0x1f3   : > { %3021 = vst.msk [vmem:[%s4827_s22 + $0x90] sm:$0xff] %vm318_vm1, %v2989_v11  ;;  %v2990_v41 = vadd.f32 %v2958_v16, %v2926_v35  ;;  %v2924_v42 = vsel %vm2860_vm6, %v2828_v47, %v2892_v29  ;;  %v3943_v56 = vadd.f32 %v2725_v37, %v1548_v22  ;;  %v3911_v57 = vpop.f32.mrb[22].mxu0  ;;  %v1551_v21 = vpop.f32.mrb[23].mxu1  ;;  %v2963_v47 = vld [vmem:[%s4816_s20 + $0xc0] sm:$0xff] }
 0x1f4   : > { %3019 = vst.msk [vmem:[%s4827_s22 + $0x80] sm:$0xff] %vm318_vm1, %v2987_v23  ;;  %v2988_v58 = vadd.f32 %v2956_v18, %v2924_v42  ;;  %v2833_v39 = vadd.f32 %v3942_v36, %v4811_v54  ;;  %v3944_v55 = vadd.f32 %v3911_v57, %v3775_v40  ;;  %v2728_v30 = vpop.f32.mrb[23].mxu0 }
 0x1f5   : > { %3022 = vst.msk [vmem:[%s4827_s22 + $0x98] sm:$0xff] %vm318_vm1, %v2990_v41  ;;  %v2831_v61 = vadd.f32 %v3943_v56, %v4811_v54  ;;  %v3945_v34 = vadd.f32 %v2728_v30, %v1551_v21 }
 0x1f6   : > { %3020 = vst.msk [vmem:[%s4827_s22 + $0x88] sm:$0xff] %vm318_vm1, %v2988_v58  ;;  %vm2865_vm7 = vcmp.gt.f32.partialorder %v2833_v39, 0.0  ;;  %v2897_v1 = vmul.f32 0.2, %v2833_v39  ;;  %v2834_v10 = vadd.f32 %v3944_v55, %v4811_v54 }
 0x1f7   : > { %vm2863_vm8 = vcmp.gt.f32.partialorder %v2831_v61, 0.0  ;;  %v2895_v53 = vmul.f32 0.2, %v2831_v61  ;;  %v2832_v3 = vadd.f32 %v3945_v34, %v4811_v54 }
 0x1f8   : > { %v2929_v15 = vsel %vm2865_vm7, %v2833_v39, %v2897_v1  ;;  %vm2866_vm9 = vcmp.gt.f32.partialorder %v2834_v10, 0.0  ;;  %v2898_v19 = vmul.f32 0.2, %v2834_v10  ;;  %v3778_v46 = vpop.f32.mrb[24].mxu1 }
 0x1f9   : > { %v2993_v27 = vadd.f32 %v2961_v9, %v2929_v15  ;;  %v2927_v32 = vsel %vm2863_vm8, %v2831_v61, %v2895_v53  ;;  %vm2864_vm10 = vcmp.gt.f32.partialorder %v2832_v3, 0.0  ;;  %v2896_v33 = vmul.f32 0.2, %v2832_v3  ;;  %v3914_v48 = vpop.f32.mrb[24].mxu0  ;;  %v1564_v49 = vpop.f32.mrb[25].mxu1 }
 0x1fa   : > { %v2991_v50 = vadd.f32 %v2959_v45, %v2927_v32  ;;  %v2930_v51 = vsel %vm2866_vm9, %v2834_v10, %v2898_v19  ;;  %v3946_v62 = vadd.f32 %v3914_v48, %v3778_v46  ;;  %v2741_v63 = vpop.f32.mrb[25].mxu0  ;;  %v3779_v0 = vpop.f32.mrb[26].mxu1  ;;  %v2969_v10 = vld [vmem:[%s4816_s20 + $0xf0] sm:$0xff]  ;;  %v2970_v46 = vld [vmem:[%s4816_s20 + $0xf8] sm:$0xff] }
 0x1fb   : > { %3025 = vst.msk [vmem:[%s4827_s22 + $0xb0] sm:$0xff] %vm318_vm1, %v2993_v27  ;;  %v2994_v2 = vadd.f32 %v2962_v26, %v2930_v51  ;;  %v2928_v12 = vsel %vm2864_vm10, %v2832_v3, %v2896_v33  ;;  %v3947_v52 = vadd.f32 %v2741_v63, %v1564_v49  ;;  %v3915_v5 = vpop.f32.mrb[26].mxu0  ;;  %v1567_v6 = vpop.f32.mrb[27].mxu1  ;;  %v2967_v3 = vld [vmem:[%s4816_s20 + $0xe0] sm:$0xff] }
 0x1fc   : > { %3023 = vst.msk [vmem:[%s4827_s22 + $0xa0] sm:$0xff] %vm318_vm1, %v2991_v50  ;;  %v2992_v7 = vadd.f32 %v2960_v38, %v2928_v12  ;;  %v2837_v8 = vadd.f32 %v3946_v62, %v4811_v54  ;;  %v3948_v24 = vadd.f32 %v3915_v5, %v3779_v0  ;;  %v2744_v25 = vpop.f32.mrb[27].mxu0  ;;  %v2968_v38 = vld [vmem:[%s4816_s20 + $0xe8] sm:$0xff] }
 0x1fd   : > { %3026 = vst.msk [vmem:[%s4827_s22 + $0xb8] sm:$0xff] %vm318_vm1, %v2994_v2  ;;  %v2835_v28 = vadd.f32 %v3947_v52, %v4811_v54  ;;  %v3949_v31 = vadd.f32 %v2744_v25, %v1567_v6 }
 0x1fe   : > { %3024 = vst.msk [vmem:[%s4827_s22 + $0xa8] sm:$0xff] %vm318_vm1, %v2992_v7  ;;  %vm2869_vm11 = vcmp.gt.f32.partialorder %v2837_v8, 0.0  ;;  %v2901_v13 = vmul.f32 0.2, %v2837_v8  ;;  %v2838_v14 = vadd.f32 %v3948_v24, %v4811_v54 }
 0x1ff   : > { %vm2867_vm12 = vcmp.gt.f32.partialorder %v2835_v28, 0.0  ;;  %v2899_v44 = vmul.f32 0.2, %v2835_v28  ;;  %v2836_v59 = vadd.f32 %v3949_v31, %v4811_v54 }
 0x200   : > { %v2933_v60 = vsel %vm2869_vm11, %v2837_v8, %v2901_v13  ;;  %vm2870_vm13 = vcmp.gt.f32.partialorder %v2838_v14, 0.0  ;;  %v2902_v16 = vmul.f32 0.2, %v2838_v14  ;;  %v3782_v11 = vpop.f32.mrb[28].mxu1 }
 0x201   : > { %v2997_v17 = vadd.f32 %v2965_v43, %v2933_v60  ;;  %v2931_v29 = vsel %vm2867_vm12, %v2835_v28, %v2899_v44  ;;  %vm2868_vm14 = vcmp.gt.f32.partialorder %v2836_v59, 0.0  ;;  %v2900_v18 = vmul.f32 0.2, %v2836_v59  ;;  %v3918_v22 = vpop.f32.mrb[28].mxu0  ;;  %v1580_v23 = vpop.f32.mrb[29].mxu1 }
 0x202   : > { %v2995_v35 = vadd.f32 %v2963_v47, %v2931_v29  ;;  %v2934_v36 = vsel %vm2870_vm13, %v2838_v14, %v2902_v16  ;;  %v3950_v37 = vadd.f32 %v3918_v22, %v3782_v11  ;;  %v2757_v40 = vpop.f32.mrb[29].mxu0  ;;  %v3783_v41 = vpop.f32.mrb[30].mxu1 }
 0x203   : > { %3029 = vst.msk [vmem:[%s4827_s22 + $0xd0] sm:$0xff] %vm318_vm1, %v2997_v17  ;;  %v2998_v42 = vadd.f32 %v2966_v4, %v2934_v36  ;;  %v2932_v56 = vsel %vm2868_vm14, %v2836_v59, %v2900_v18  ;;  %v3951_v57 = vadd.f32 %v2757_v40, %v1580_v23  ;;  %v3919_v21 = vpop.f32.mrb[30].mxu0  ;;  %v1583_v58 = vpop.f32.mrb[31].mxu1 }
 0x204   : > { %3027 = vst.msk [vmem:[%s4827_s22 + $0xc0] sm:$0xff] %vm318_vm1, %v2995_v35  ;;  %v2996_v39 = vadd.f32 %v2964_v20, %v2932_v56  ;;  %v2841_v55 = vadd.f32 %v3950_v37, %v4811_v54  ;;  %v3952_v30 = vadd.f32 %v3919_v21, %v3783_v41  ;;  %v2760_v61 = vpop.f32.mrb[31].mxu0 }
 0x205   : > { %3030 = vst.msk [vmem:[%s4827_s22 + $0xd8] sm:$0xff] %vm318_vm1, %v2998_v42  ;;  %v2839_v34 = vadd.f32 %v3951_v57, %v4811_v54  ;;  %v3953_v1 = vadd.f32 %v2760_v61, %v1583_v58 }
 0x206   : > { %3028 = vst.msk [vmem:[%s4827_s22 + $0xc8] sm:$0xff] %vm318_vm1, %v2996_v39  ;;  %vm2873_vm15 = vcmp.gt.f32.partialorder %v2841_v55, 0.0  ;;  %v2905_v9 = vmul.f32 0.2, %v2841_v55  ;;  %v2842_v53 = vadd.f32 %v3952_v30, %v4811_v54 }
 0x207   : > { %vm2871_vm0 = vcmp.gt.f32.partialorder %v2839_v34, 0.0  ;;  %v2903_v45 = vmul.f32 0.2, %v2839_v34  ;;  %v2840_v15 = vadd.f32 %v3953_v1, %v4811_v54 }
 0x208   : > { %v2937_v19 = vsel %vm2873_vm15, %v2841_v55, %v2905_v9  ;;  %vm2874_vm2 = vcmp.gt.f32.partialorder %v2842_v53, 0.0  ;;  %v2906_v26 = vmul.f32 0.2, %v2842_v53 }
 0x209   : > { %v3001_v27 = vadd.f32 %v2969_v10, %v2937_v19  ;;  %v2935_v32 = vsel %vm2871_vm0, %v2839_v34, %v2903_v45  ;;  %vm2872_vm3 = vcmp.gt.f32.partialorder %v2840_v15, 0.0  ;;  %v2904_v33 = vmul.f32 0.2, %v2840_v15 }
 0x20a   : > { %v2999_v48 = vadd.f32 %v2967_v3, %v2935_v32  ;;  %v2938_v49 = vsel %vm2874_vm2, %v2842_v53, %v2906_v26 }
 0x20b   : > { %3033 = vst.msk [vmem:[%s4827_s22 + $0xf0] sm:$0xff] %vm318_vm1, %v3001_v27  ;;  %v3002_v50 = vadd.f32 %v2970_v46, %v2938_v49  ;;  %v2936_v51 = vsel %vm2872_vm3, %v2840_v15, %v2904_v33 }
 0x20c   : > { %3031 = vst.msk [vmem:[%s4827_s22 + $0xe0] sm:$0xff] %vm318_vm1, %v2999_v48  ;;  %v3000_v54 = vadd.f32 %v2968_v38, %v2936_v51 }
 0x20d   : > { %3034 = vst.msk [vmem:[%s4827_s22 + $0xf8] sm:$0xff] %vm318_vm1, %v3002_v50 }
 0x20e   : > { %3032 = vst.msk [vmem:[%s4827_s22 + $0xe8] sm:$0xff] %vm318_vm1, %v3000_v54 }
 0x20f PF: > { %s14_s15 = sadd.s32 1, %s4203_s15  }
 0x210   : > { %p11_p4 = scmp.ge.s32.totalorder %s14_s15, 4  }
 0x212   :  { %13 = sbr.rel (!%p11_p4) target bundleno = 1 (0x1), region = 79 }

</bundles_post_ra>
